<compile_context>
chip_gen: v5e
topology: v5e:2x2
jax: 0.10.0
libtpu: 0.0.40
codegen_flags: <defaults>
</compile_context>

<pallas_src>
import jax
import jax.numpy as jnp
from jax.experimental import pallas as pl
from jax.experimental.pallas import tpu as pltpu


# ----------------------------------------------------------------------------
# Fused kernel: pointwise Conv3d + relu6(+3) + L1-norm  ->  Conv1d(K=9)
#               + relu6(+3) + L1-norm, one (batch, L-tile) per grid step.
# ----------------------------------------------------------------------------
def _fused_conv_norm_kernel(w3_ref, b3_ref, w1s_ref, b1_ref, xc_ref, xh_ref, o_ref):
    # w3_ref : (Cmid, Cin)        stage-1 pointwise weights
    # b3_ref : (Cmid, 1)          stage-1 bias + 3
    # w1s_ref: (Cout, K*Cmid)     Conv1d weights, row (k*Cmid + c) order
    # b1_ref : (Cout, 1)          Conv1d bias + 3
    # xc_ref : (1, Cin, TL)       main input tile (flat columns [j*TL, j*TL+TL))
    # xh_ref : (1, Cin, 128)      halo tile starting at column (j+1)*TL (clamped)
    # o_ref  : (1, Cout, TL)      output tile
    c_mid = w3_ref.shape[0]
    K = w1s_ref.shape[1] // c_mid
    TL = o_ref.shape[2]

    # Window of flat spatial columns [j*TL, j*TL + TL + K - 1).
    xwin = jnp.concatenate([xc_ref[0], xh_ref[0, :, :K - 1]], axis=1)  # (Cin, TL+K-1)
    cin = xwin.shape[0]

    # ---- stage 1: 1x1x1 Conv3d on the VPU (tiny Cin=3 contraction) ----------
    w3 = w3_ref[...]
    y = w3[:, 0:1] * xwin[0:1, :]
    for c in range(1, cin):                                   # static unroll (Cin=3)
        y = y + w3[:, c:c + 1] * xwin[c:c + 1, :]
    y = y + b3_ref[...]                                       # bias already holds +3
    y = jnp.clip(y, 0.0, 6.0)                                 # relu6
    inv1 = 1.0 / jnp.maximum(jnp.sum(y, axis=0, keepdims=True), 1e-12)   # y >= 0
    y = y * inv1                                              # (Cmid, TL+K-1)

    # ---- stage 2: Conv1d(Cmid->Cout, K, valid) as ONE MXU contraction -------
    stacked = jnp.concatenate([y[:, k:k + TL] for k in range(K)], axis=0)  # (K*Cmid, TL)
    z = jnp.dot(w1s_ref[...], stacked, preferred_element_type=jnp.float32)
    z = z + b1_ref[...]                                       # bias already holds +3
    z = jnp.clip(z, 0.0, 6.0)                                 # relu6
    inv2 = 1.0 / jnp.maximum(jnp.sum(z, axis=0, keepdims=True), 1e-12)
    o_ref[0] = z * inv2


# ----------------------------------------------------------------------------
# Full forward pass
# ----------------------------------------------------------------------------
@jax.jit
def model_forward(x1, w3, b3, w1, b1):
    N, Cin, D, H, W = x1.shape
    Cout, Cmid, K = w1.shape[0], w1.shape[1], w1.shape[2]

    # Conv3d(kernel=1, padding=1): zero-pad each spatial dim by 1 on both sides.
    xp = jnp.pad(x1, ((0, 0), (0, 0), (1, 1), (1, 1), (1, 1)))
    Dp, Hp, Wp = D + 2, H + 2, W + 2
    Lp = Dp * Hp * Wp
    x_flat = xp.reshape(N, Cin, Lp)            # free reshape, stays contiguous

    L_out = Lp - (K - 1)
    assert Lp >= 128, "flattened spatial extent too small for this tiling"

    # Lane-dense tile; 8192 keeps per-step VMEM ~5 MB (fits default scoped VMEM
    # on v5e/v6e/v7x) while keeping the grid-step overhead small.
    TL = min(8192, max(128, (Lp // 128) * 128))
    num_tiles = -(-L_out // TL)
    hsteps = TL // 128
    last_h = -(-Lp // 128) - 1                 # last valid 128-block index along L

    # Weight / bias preprocessing (tiny arrays, negligible cost).
    w3m = w3.reshape(Cmid, Cin)                                   # (8, 3)
    w1s = jnp.transpose(w1, (0, 2, 1)).reshape(Cout, K * Cmid)    # (8, 72): [o, k*Cmid+c]
    b3e = (b3 + 3.0).reshape(Cmid, 1)                             # fold +3 into bias
    b1e = (b1 + 3.0).reshape(Cout, 1)

    return pl.pallas_call(
        _fused_conv_norm_kernel,
        out_shape=jax.ShapeDtypeStruct((N, Cout, L_out), jnp.float32),
        grid=(N, num_tiles),
        in_specs=[
            pl.BlockSpec((Cmid, Cin), lambda n, j: (0, 0)),
            pl.BlockSpec((Cmid, 1), lambda n, j: (0, 0)),
            pl.BlockSpec((Cout, K * Cmid), lambda n, j: (0, 0)),
            pl.BlockSpec((Cout, 1), lambda n, j: (0, 0)),
            pl.BlockSpec((1, Cin, TL), lambda n, j: (n, 0, j)),
            # Halo: 128 columns starting at element (j+1)*TL; clamped to stay
            # in-bounds (the clamped case only feeds discarded output columns).
            pl.BlockSpec((1, Cin, 128),
                         lambda n, j: (n, 0, jnp.minimum((j + 1) * hsteps, last_h))),
        ],
        out_specs=pl.BlockSpec((1, Cout, TL), lambda n, j: (n, 0, j)),
        compiler_params=pltpu.CompilerParams(
            dimension_semantics=("parallel", "parallel")),
    )(w3m, b3e, w1s, b1e, x_flat, x_flat)


# ----------------------------------------------------------------------------
# Pure-JAX reference for validation
# ----------------------------------------------------------------------------
def reference_forward(x1, w3, b3, w1, b1):
    w3m = w3.reshape(w3.shape[0], w3.shape[1])
    xp = jnp.pad(x1, ((0, 0), (0, 0), (1, 1), (1, 1), (1, 1)))
    v1 = jnp.einsum('ncdhw,oc->nodhw', xp, w3m) + b3[None, :, None, None, None]
    v3 = jnp.clip(v1 + 3.0, 0.0, 6.0)
    v4 = v3 / jnp.maximum(jnp.sum(jnp.abs(v3), axis=1, keepdims=True), 1e-12)
    N, C, Dp, Hp, Wp = v4.shape
    v4f = v4.reshape(N, C, Dp * Hp * Wp)
    K = w1.shape[-1]
    L_out = v4f.shape[-1] - K + 1
    xs = jnp.stack([v4f[:, :, k:k + L_out] for k in range(K)], axis=-1)  # (N,Ci,L,K)
    v5 = jnp.einsum('nilk,oik->nol', xs, w1) + b1[None, :, None]
    v7 = jnp.clip(v5 + 3.0, 0.0, 6.0)
    v8 = v7 / jnp.maximum(jnp.sum(jnp.abs(v7), axis=1, keepdims=True), 1e-12)
    return v8


if __name__ == "__main__":
    key = jax.random.PRNGKey(0)
    k_x, k_w3, k_b3, k_w1, k_b1 = jax.random.split(key, 5)

    # Small shapes consistent with the module (original: (5, 3, 64, 64, 64)).
    N, Cin, D = 2, 3, 8
    x1 = jax.random.normal(k_x, (N, Cin, D, D, D), dtype=jnp.float32)

    # Conv3d(3, 8, 1): weight (8, 3, 1, 1, 1); bias (8,)
    w3 = jax.random.normal(k_w3, (8, 3, 1, 1, 1), dtype=jnp.float32) * 0.2
    b3 = jax.random.normal(k_b3, (8,), dtype=jnp.float32) * 0.1
    # Conv1d(8, 8, 9): weight (8, 8, 9); bias (8,)
    w1 = jax.random.normal(k_w1, (8, 8, 9), dtype=jnp.float32) * 0.1
    b1 = jax.random.normal(k_b1, (8,), dtype=jnp.float32) * 0.1

    out = model_forward(x1, w3, b3, w1, b1)
    out = jax.block_until_ready(out)

    ref = reference_forward(x1, w3, b3, w1, b1)
    err = float(jnp.max(jnp.abs(out - ref)))
    assert out.shape == (N, 8, (D + 2) ** 3 - 8), out.shape
    assert err < 1e-5, f"max abs err {err}"
    print("KERNEL_OK")
</pallas_src>

<mosaic_0001>
module attributes {stable_mosaic.version = 11 : i64} {
  func.func @_fused_conv_norm_kernel(%arg0: i32, %arg1: i32, %arg2: memref<8x3xf32, #tpu.memory_space<vmem>>, %arg3: memref<8x1xf32, #tpu.memory_space<vmem>>, %arg4: memref<8x72xf32, #tpu.memory_space<vmem>>, %arg5: memref<8x1xf32, #tpu.memory_space<vmem>>, %arg6: memref<1x3x896xf32, #tpu.memory_space<vmem>>, %arg7: memref<1x3x128xf32, #tpu.memory_space<vmem>>, %arg8: memref<1x8x896xf32, #tpu.memory_space<vmem>>) attributes {dimension_semantics = [#tpu.dimension_semantics<parallel>, #tpu.dimension_semantics<parallel>], iteration_bounds = array<i64: 2, 2>, scalar_prefetch = 0 : i64, scratch_operands = 0 : i64, tpu.core_type = #tpu.core_type<tc>, window_params = [{pipeline_mode = #tpu.pipeline_mode<synchronous>, transform_indices = @transform_0, window_bounds = array<i64: 8, 3>}, {pipeline_mode = #tpu.pipeline_mode<synchronous>, transform_indices = @transform_1, window_bounds = array<i64: 8, 1>}, {pipeline_mode = #tpu.pipeline_mode<synchronous>, transform_indices = @transform_2, window_bounds = array<i64: 8, 72>}, {pipeline_mode = #tpu.pipeline_mode<synchronous>, transform_indices = @transform_3, window_bounds = array<i64: 8, 1>}, {transform_indices = @transform_4, window_bounds = array<i64: 1, 3, 896>}, {transform_indices = @transform_5, window_bounds = array<i64: 1, 3, 128>}, {transform_indices = @transform_6, window_bounds = array<i64: 1, 8, 896>}]} {
    %c0 = arith.constant 0 : index
    %c0_0 = arith.constant 0 : index
    %c0_1 = arith.constant 0 : index
    %0 = vector.load %arg6[%c0, %c0_0, %c0_1] : memref<1x3x896xf32, #tpu.memory_space<vmem>>, vector<1x3x896xf32>
    %1 = vector.shape_cast %0 : vector<1x3x896xf32> to vector<3x896xf32>
    %c0_2 = arith.constant 0 : index
    %c0_3 = arith.constant 0 : index
    %c0_4 = arith.constant 0 : index
    %2 = vector.load %arg7[%c0_2, %c0_3, %c0_4] : memref<1x3x128xf32, #tpu.memory_space<vmem>>, vector<1x3x8xf32>
    %3 = vector.shape_cast %2 : vector<1x3x8xf32> to vector<3x8xf32>
    %4 = tpu.concatenate %1, %3 in 1 : vector<3x896xf32>, vector<3x8xf32> -> vector<3x904xf32>
    %c0_5 = arith.constant 0 : index
    %c0_6 = arith.constant 0 : index
    %5 = vector.load %arg2[%c0_5, %c0_6] : memref<8x3xf32, #tpu.memory_space<vmem>>, vector<8x3xf32>
    %6 = vector.extract_strided_slice %5 {offsets = [0, 0], sizes = [8, 1], strides = [1, 1]} : vector<8x3xf32> to vector<8x1xf32>
    %7 = vector.extract_strided_slice %4 {offsets = [0, 0], sizes = [1, 904], strides = [1, 1]} : vector<3x904xf32> to vector<1x904xf32>
    %8 = vector.broadcast %6 : vector<8x1xf32> to vector<8x904xf32>
    %9 = vector.broadcast %7 : vector<1x904xf32> to vector<8x904xf32>
    %10 = arith.mulf %8, %9 : vector<8x904xf32>
    %11 = vector.extract_strided_slice %5 {offsets = [0, 1], sizes = [8, 1], strides = [1, 1]} : vector<8x3xf32> to vector<8x1xf32>
    %12 = vector.extract_strided_slice %4 {offsets = [1, 0], sizes = [1, 904], strides = [1, 1]} : vector<3x904xf32> to vector<1x904xf32>
    %13 = vector.broadcast %11 : vector<8x1xf32> to vector<8x904xf32>
    %14 = vector.broadcast %12 : vector<1x904xf32> to vector<8x904xf32>
    %15 = arith.mulf %13, %14 : vector<8x904xf32>
    %16 = arith.addf %10, %15 : vector<8x904xf32>
    %17 = vector.extract_strided_slice %5 {offsets = [0, 2], sizes = [8, 1], strides = [1, 1]} : vector<8x3xf32> to vector<8x1xf32>
    %18 = vector.extract_strided_slice %4 {offsets = [2, 0], sizes = [1, 904], strides = [1, 1]} : vector<3x904xf32> to vector<1x904xf32>
    %19 = vector.broadcast %17 : vector<8x1xf32> to vector<8x904xf32>
    %20 = vector.broadcast %18 : vector<1x904xf32> to vector<8x904xf32>
    %21 = arith.mulf %19, %20 : vector<8x904xf32>
    %22 = arith.addf %16, %21 : vector<8x904xf32>
    %c0_7 = arith.constant 0 : index
    %c0_8 = arith.constant 0 : index
    %23 = vector.load %arg3[%c0_7, %c0_8] : memref<8x1xf32, #tpu.memory_space<vmem>>, vector<8x1xf32>
    %24 = vector.broadcast %23 : vector<8x1xf32> to vector<8x904xf32>
    %25 = arith.addf %22, %24 : vector<8x904xf32>
    %cst = arith.constant 0.000000e+00 : f32
    %cst_9 = arith.constant 6.000000e+00 : f32
    %26 = vector.broadcast %cst : f32 to vector<8x904xf32>
    %27 = arith.maximumf %26, %25 : vector<8x904xf32>
    %28 = vector.broadcast %cst_9 : f32 to vector<8x904xf32>
    %29 = arith.minimumf %28, %27 : vector<8x904xf32>
    %cst_10 = arith.constant dense<0.000000e+00> : vector<904xf32>
    %30 = vector.multi_reduction <add>, %29, %cst_10 [0] : vector<8x904xf32> to vector<904xf32>
    %31 = vector.shape_cast %30 : vector<904xf32> to vector<1x904xf32>
    %cst_11 = arith.constant 9.99999996E-13 : f32
    %32 = vector.broadcast %cst_11 : f32 to vector<1x904xf32>
    %33 = arith.maximumf %31, %32 : vector<1x904xf32>
    %cst_12 = arith.constant 1.000000e+00 : f32
    %34 = vector.broadcast %cst_12 : f32 to vector<1x904xf32>
    %35 = arith.divf %34, %33 : vector<1x904xf32>
    %36 = vector.broadcast %35 : vector<1x904xf32> to vector<8x904xf32>
    %37 = arith.mulf %29, %36 : vector<8x904xf32>
    %38 = vector.extract_strided_slice %37 {offsets = [0, 0], sizes = [8, 896], strides = [1, 1]} : vector<8x904xf32> to vector<8x896xf32>
    %39 = vector.extract_strided_slice %37 {offsets = [0, 1], sizes = [8, 896], strides = [1, 1]} : vector<8x904xf32> to vector<8x896xf32>
    %40 = vector.extract_strided_slice %37 {offsets = [0, 2], sizes = [8, 896], strides = [1, 1]} : vector<8x904xf32> to vector<8x896xf32>
    %41 = vector.extract_strided_slice %37 {offsets = [0, 3], sizes = [8, 896], strides = [1, 1]} : vector<8x904xf32> to vector<8x896xf32>
    %42 = vector.extract_strided_slice %37 {offsets = [0, 4], sizes = [8, 896], strides = [1, 1]} : vector<8x904xf32> to vector<8x896xf32>
    %43 = vector.extract_strided_slice %37 {offsets = [0, 5], sizes = [8, 896], strides = [1, 1]} : vector<8x904xf32> to vector<8x896xf32>
    %44 = vector.extract_strided_slice %37 {offsets = [0, 6], sizes = [8, 896], strides = [1, 1]} : vector<8x904xf32> to vector<8x896xf32>
    %45 = vector.extract_strided_slice %37 {offsets = [0, 7], sizes = [8, 896], strides = [1, 1]} : vector<8x904xf32> to vector<8x896xf32>
    %46 = vector.extract_strided_slice %37 {offsets = [0, 8], sizes = [8, 896], strides = [1, 1]} : vector<8x904xf32> to vector<8x896xf32>
    %47 = tpu.concatenate %38, %39, %40, %41, %42, %43, %44, %45, %46 in 0 : vector<8x896xf32>, vector<8x896xf32>, vector<8x896xf32>, vector<8x896xf32>, vector<8x896xf32>, vector<8x896xf32>, vector<8x896xf32>, vector<8x896xf32>, vector<8x896xf32> -> vector<72x896xf32>
    %c0_13 = arith.constant 0 : index
    %c0_14 = arith.constant 0 : index
    %48 = vector.load %arg4[%c0_13, %c0_14] : memref<8x72xf32, #tpu.memory_space<vmem>>, vector<8x72xf32>
    %cst_15 = arith.constant dense<0.000000e+00> : vector<8x896xf32>
    %49 = tpu.matmul %48, %47, %cst_15 {dimension_numbers = #tpu.dot_dimension_numbers<[1], [0], [0], [1], [0, 0, 1, 1], [], []>} : vector<8x72xf32>, vector<72x896xf32>, vector<8x896xf32> -> vector<8x896xf32>
    %c0_16 = arith.constant 0 : index
    %c0_17 = arith.constant 0 : index
    %50 = vector.load %arg5[%c0_16, %c0_17] : memref<8x1xf32, #tpu.memory_space<vmem>>, vector<8x1xf32>
    %51 = vector.broadcast %50 : vector<8x1xf32> to vector<8x896xf32>
    %52 = arith.addf %49, %51 : vector<8x896xf32>
    %cst_18 = arith.constant 0.000000e+00 : f32
    %cst_19 = arith.constant 6.000000e+00 : f32
    %53 = vector.broadcast %cst_18 : f32 to vector<8x896xf32>
    %54 = arith.maximumf %53, %52 : vector<8x896xf32>
    %55 = vector.broadcast %cst_19 : f32 to vector<8x896xf32>
    %56 = arith.minimumf %55, %54 : vector<8x896xf32>
    %cst_20 = arith.constant dense<0.000000e+00> : vector<896xf32>
    %57 = vector.multi_reduction <add>, %56, %cst_20 [0] : vector<8x896xf32> to vector<896xf32>
    %58 = vector.shape_cast %57 : vector<896xf32> to vector<1x896xf32>
    %cst_21 = arith.constant 9.99999996E-13 : f32
    %59 = vector.broadcast %cst_21 : f32 to vector<1x896xf32>
    %60 = arith.maximumf %58, %59 : vector<1x896xf32>
    %cst_22 = arith.constant 1.000000e+00 : f32
    %61 = vector.broadcast %cst_22 : f32 to vector<1x896xf32>
    %62 = arith.divf %61, %60 : vector<1x896xf32>
    %63 = vector.broadcast %62 : vector<1x896xf32> to vector<8x896xf32>
    %64 = arith.mulf %56, %63 : vector<8x896xf32>
    %c0_23 = arith.constant 0 : index
    %c0_24 = arith.constant 0 : index
    %c0_25 = arith.constant 0 : index
    %65 = vector.load %arg8[%c0_23, %c0_24, %c0_25] : memref<1x8x896xf32, #tpu.memory_space<vmem>>, vector<1x8x896xf32>
    %66 = vector.shape_cast %65 : vector<1x8x896xf32> to vector<8x896xf32>
    %67 = vector.shape_cast %64 : vector<8x896xf32> to vector<1x8x896xf32>
    tpu.vector_store %arg8[%c0_23, %c0_24, %c0_25], %67 {strides = array<i32>} : memref<1x8x896xf32, #tpu.memory_space<vmem>>, vector<1x8x896xf32>,
    return
  }
  func.func @transform_0(%arg0: i32, %arg1: i32) -> (i32, i32) {
    %c0_i32 = arith.constant 0 : i32
    %c0_i32_0 = arith.constant 0 : i32
    %c0_i32_1 = arith.constant 0 : i32
    return %c0_i32, %c0_i32_0 : i32, i32
  }
  func.func @transform_1(%arg0: i32, %arg1: i32) -> (i32, i32) {
    %c0_i32 = arith.constant 0 : i32
    %c0_i32_0 = arith.constant 0 : i32
    %c0_i32_1 = arith.constant 0 : i32
    return %c0_i32, %c0_i32_0 : i32, i32
  }
  func.func @transform_2(%arg0: i32, %arg1: i32) -> (i32, i32) {
    %c0_i32 = arith.constant 0 : i32
    %c0_i32_0 = arith.constant 0 : i32
    %c0_i32_1 = arith.constant 0 : i32
    return %c0_i32, %c0_i32_0 : i32, i32
  }
  func.func @transform_3(%arg0: i32, %arg1: i32) -> (i32, i32) {
    %c0_i32 = arith.constant 0 : i32
    %c0_i32_0 = arith.constant 0 : i32
    %c0_i32_1 = arith.constant 0 : i32
    return %c0_i32, %c0_i32_0 : i32, i32
  }
  func.func @transform_4(%arg0: i32, %arg1: i32) -> (i32, i32, i32) {
    %c0_i32 = arith.constant 0 : i32
    %c0_i32_0 = arith.constant 0 : i32
    return %arg0, %c0_i32, %arg1 : i32, i32, i32
  }
  func.func @transform_5(%arg0: i32, %arg1: i32) -> (i32, i32, i32) {
    %c1_i32 = arith.constant 1 : i32
    %0 = arith.addi %arg1, %c1_i32 : i32
    %c7_i32 = arith.constant 7 : i32
    %1 = arith.muli %0, %c7_i32 : i32
    %c7_i32_0 = arith.constant 7 : i32
    %2 = arith.minsi %1, %c7_i32_0 : i32
    %c0_i32 = arith.constant 0 : i32
    %c0_i32_1 = arith.constant 0 : i32
    return %arg0, %c0_i32, %2 : i32, i32, i32
  }
  func.func @transform_6(%arg0: i32, %arg1: i32) -> (i32, i32, i32) {
    %c0_i32 = arith.constant 0 : i32
    %c0_i32_0 = arith.constant 0 : i32
    return %arg0, %c0_i32, %arg1 : i32, i32, i32
  }
}

</mosaic_0001>

<bundles_post_ra>
// kernel: model_forward.1
= control target key start
LH: loop header
LB: loop body
LE: loop exit
PB: predicated region body
PF: predicated region fallthrough
CT: control target
= control target key end

     0   :  { %s2454_s0 = inlined_call_operand.vmem [shape: f32[8,3], index: 0, kind: input, shape index: {}]   ;;  %s2455_s1 = inlined_call_operand.vmem [shape: f32[8,1], index: 1, kind: input, shape index: {}]   ;;  %s2456_s2 = inlined_call_operand.vmem [shape: f32[8,72], index: 2, kind: input, shape index: {}]   ;;  %s2457_s3 = inlined_call_operand.vmem [shape: f32[8,1], index: 3, kind: input, shape index: {}]   ;;  %s2458_s4 = inlined_call_operand.vmem [shape: f32[2,3,1000], index: 4, kind: input, shape index: {}, may-alias: {4,5}]   ;;  %s2459_s5 = inlined_call_operand.vmem [shape: f32[2,3,1000], index: 5, kind: input, shape index: {}, may-alias: {4,5}]   ;;  %s2460_s6 = inlined_call_operand.hbm [shape: f32[2,8,992], index: 6, kind: output, shape index: {}]  }
   0x1   :  { %2461 = sst [smem:[#allocation5_spill]] %s2454_s0 }
   0x2   :  { %2462 = sst [smem:[#allocation6_spill]] %s2455_s1 }
   0x3   :  { %2463 = sst [smem:[#allocation7_spill]] %s2456_s2 }
   0x4   :  { %2464 = sst [smem:[#allocation8_spill]] %s2457_s3 }
   0x5   :  { %11 = vsyncpa [#allocation3], 0 }
   0x6   :  { %13 = vsyncpa [#allocation3 + $0x1], 0  ;;  %s1839_s21 = smov 0   ;;  %s1841_s22 = smov 0  }
   0x7   :  { %s1843_s23 = smov 0   ;;  %s1845_s24 = smov 0  }
   0x8   :  { %s1847_s25 = smov 0   ;;  %s1849_s26 = smov 0  }
   0x9   :  { %s1851_s27 = smov 0   ;;  %s1853_s28 = smov 0  }
   0xa LB: > { %s1400_s29 = sadd.s32 4294967295, %s1790_s28   ;;  %s1401_s30 = sadd.s32 4294967294, %s1790_s28   ;;  %s1790_s28 = sphi %s1853_s28, %s19_s28   ;;  %s1786_s27 = sphi %s1851_s27, %s2490_s27   ;;  %s1782_s26 = sphi %s1849_s26, %s2489_s26   ;;  %s1778_s25 = sphi %s1847_s25, %s2488_s25   ;;  %s1774_s24 = sphi %s1845_s24, %s2487_s24   ;;  %s1770_s23 = sphi %s1843_s23, %s2486_s23   ;;  %s1766_s22 = sphi %s1841_s22, %s2485_s22   ;;  %s1762_s21 = sphi %s1839_s21, %s2484_s21  }
   0xb   : > { %s28_s7 = sadd.s32 1, %s1782_s26  ;;  %s31_s8 = sadd.s32 1, %s1786_s27 }
   0xc   : > { %p29_p0 = scmp.ge.s32.totalorder %s28_s7, 2  ;;  %p198_p1 = scmp.ne.s32.totalorder %s1770_s23, %s1766_s22 }
   0xd   : > { %p199_p2 = scmp.eq.s32.totalorder %s1400_s29, 3  ;;  %p204_p5 = scmp.ne.s32.totalorder %s1766_s22, %s1762_s21 }
   0xe   : > { %s2492_s7 = smov (%p29_p0, %s28_s7), 0  ;;  %s2494_s8 = smov (!%p29_p0, %s31_s8), %s1786_s27 }
   0xf   : > { %s184_s9 = ssub.s32 %s1782_s26, %s2492_s7  ;;  %p1890_p3 = por %p199_p2, %p198_p1 }
  0x10   : > { %p33_p4 = scmp.ge.s32.totalorder %s2494_s8, 2  ;;  %p205_p6 = scmp.eq.s32.totalorder %s1401_s30, 3 }
  0x11   : > { %p1404_p7 = scmp.ge.s32.totalorder %s1790_s28, 1  ;;  %p275_p9 = scmp.lt.s32.totalorder %s1790_s28, 5 }
  0x12   : > { %s2496_s8 = smov (%p33_p4, %s2494_s8), 0  ;;  %p1899_p8 = por %p205_p6, %p204_p5 }
  0x13   : > { %s183_s12 = ssub.s32 %s1786_s27, %s2496_s8  ;;  %s188_s13 = sadd.s32 1, %s1770_s23 }
  0x14   : > { %s185_s14 = sor.u32 %s184_s9, %s183_s12  ;;  %p276_p10 = pnand %p1404_p7, %p275_p9 }
  0x15   : > { %p186_p11 = scmp.eq.s32.totalorder %s185_s14, 0  ;;  %s2467_s0 = sld [smem:[#allocation5_spill]] (!%p276_p10) }
  0x16   : > { %279 = sbr.rel (%p276_p10) target bundleno = 609 (0x261), region = 44  ;;  %s2468_s1 = sld [smem:[#allocation6_spill]] (!%p276_p10) }
  0x17   : > { %s1908_s15 = scalar_select %p186_p11, %s1770_s23, %s188_s13  }
  0x18   : > { %s1917_s20 = smul.u32 (!%p276_p10), 7, %s1774_s24  ;;  %p330_p12 = scmp.lt.s32.totalorder (!%p276_p10), %s1778_s25, 1 }
  0x19   : > { %s343_s18 = sadd.s32 (!%p276_p10), 1, %s1774_s24  ;;  %s1796_s24 = smov (!%p276_p10), 122  }
  0x1a   : > { %p332_p13 = scmp.lt.s32.totalorder (!%p276_p10), %s1917_s20, 7  ;;  %s344_s19 = smul.u32 (!%p276_p10), 7, %s343_s18 }
  0x1b   : > { %v394_v0 = vld [vmem:[%s2467_s0] sm:$0xff]  ;;  %v1792_v1 = vmov 0   ;;  %v1793_v2 = vmov 2   ;;  %v1794_v4 = vmov 1   ;;  %s331_s29 = scalar_select %p330_p12, %s1778_s25, 1  ;;  %vm544_vm0 = vcmask 64512  }
  0x1c   : > { %1509 = vset.pattern.permute.xlu0 %v1792_v1  ;;  %1511 = vset.pattern.permute.xlu1 %v1793_v2  ;;  %v472_v3 = vld [vmem:[%s2468_s1] sm:$0xff]  ;;  %s333_s30 = scalar_select %p332_p13, %s1917_s20, 7 }
  0x1d   : > { %397 = vperm.xlu0 %1509, %v394_v0   ;;  %445 = vperm.xlu1 %1511, %v394_v0   ;;  %s1405_s9 = sshll.u32 %s331_s29, 3  ;;  %p345_p0 = scmp.lt.s32.totalorder %s344_s19, 7 }
  0x1e   : > { %1653 = vset.pattern.permute.xlu2 %v1792_v1  ;;  %s335_s12 = sadd.s32 %s1405_s9, %s333_s30  ;;  %s1795_s0 = smov 120  }
  0x1f   : > { %s1406_s13 = sshll.u32 %s335_s12, 2  ;;  %s2498_s19 = smov (!%p345_p0, %s344_s19), 7 }
  0x20   : > { %s337_s17 = scalar_lea.vmem %s2458_s4, %s1406_s13  ;;  %s2500_s19 = smov (!%p345_p0, %s2498_s19), 7 }
  0x21   : > { %v364_v5 = vld [vmem:[%s337_s17] sm:$0x77]  ;;  %v365_v6 = vld [vmem:[%s337_s17 + $0x8] sm:$0x77]  ;;  %v366_v7 = vld [vmem:[%s337_s17 + $0x10] sm:$0x77]  ;;  %s352_s29 = sadd.s32 %s1405_s9, %s2500_s19 }
  0x22   : > { %v367_v8 = vld [vmem:[%s337_s17 + $0x18] sm:$0x7]  ;;  %373 = vst [vmem:[#allocation1] ss:$2 sm:$0xff] %v364_v5  ;;  %s1411_s30 = sshll.u32 %s352_s29, 2  ;;  %s1797_s9 = smov 124  }
  0x23   : > { %375 = vst [vmem:[#allocation1 + $0x10] ss:$2 sm:$0xff] %v365_v6  ;;  %s354_s14 = scalar_lea.vmem %s2459_s5, %s1411_s30  ;;  %s1798_s13 = smov 121  }
  0x24   : > { %377 = vst [vmem:[#allocation1 + $0x20] ss:$2 sm:$0xff] %v366_v7  ;;  %v368_v10 = vld [vmem:[%s354_s14] sm:$0x7]  ;;  %s1799_s16 = smov 123   ;;  %s1800_s17 = smov 126  }
  0x25   : > { %1510 = vset.pattern.permute.xlu0 %v1794_v4  ;;  %1512 = vset.pattern.permute.xlu1 %v1792_v1  ;;  %379 = vst [vmem:[#allocation1 + $0x30] ss:$2 sm:$0xff] %v367_v8  ;;  %v407_v25 = vperm.slane %v368_v10, 0  ;;  %v455_v34 = vperm.slane %v368_v10, 2  ;;  %v427_v42 = vperm.slane %v368_v10, 1  ;;  %s1801_s18 = smov 127  }
  0x26   : > { %417 = vperm.xlu0 %1510, %v394_v0   ;;  %475 = vperm.xlu1 %1512, %v472_v3   ;;  %s1802_s19 = smov 125   ;;  %s2481_s2 = sld [smem:[#allocation7_spill]] }
  0x27   : > { %s2482_s3 = sld [smem:[#allocation8_spill]] }
  0x29   : > { %v380_v9 = vld.sshfl [vmem:[#allocation1] sm:$0xff pattern:$0x75316420]  ;;  %v381_v11 = vld.sshfl [vmem:[#allocation1 + $0x8] sm:$0xff pattern:$0x75316420] }
  0x2a   : > { %v382_v12 = vld.sshfl [vmem:[#allocation1 + $0x10] sm:$0xff pattern:$0x75316420]  ;;  %v383_v13 = vld.sshfl [vmem:[#allocation1 + $0x18] sm:$0xff pattern:$0x75316420] }
  0x2b   : > { %v384_v14 = vld.sshfl [vmem:[#allocation1 + $0x20] sm:$0xff pattern:$0x75316420]  ;;  %v385_v15 = vld.sshfl [vmem:[#allocation1 + $0x28] sm:$0xff pattern:$0x75316420] }
  0x2c   : > { %v386_v16 = vld.sshfl [vmem:[#allocation1 + $0x30] sm:$0xff pattern:$0x75316420]  ;;  %v400_v18 = vperm.slane %v380_v9, 0  ;;  %v401_v19 = vperm.slane %v381_v11, 0  ;;  %v402_v20 = vperm.slane %v382_v12, 0 }
  0x2d   : > { %v403_v21 = vperm.slane %v383_v13, 0  ;;  %v404_v22 = vperm.slane %v384_v14, 0  ;;  %v405_v23 = vperm.slane %v385_v15, 0  ;;  %v406_v24 = vperm.slane %v386_v16, 0 }
  0x2e   : > { %1654 = vset.pattern.permute.xlu0 %v1792_v1  ;;  %v448_v26 = vperm.slane %v380_v9, 2  ;;  %v449_v27 = vperm.slane %v381_v11, 2  ;;  %v450_v28 = vperm.slane %v382_v12, 2  ;;  %v451_v29 = vperm.slane %v383_v13, 2 }
  0x2f   : > { %v452_v31 = vperm.slane %v384_v14, 2  ;;  %v453_v32 = vperm.slane %v385_v15, 2  ;;  %v454_v33 = vperm.slane %v386_v16, 2  ;;  %v420_v35 = vperm.slane %v380_v9, 1 }
  0x30   : > { %v421_v36 = vperm.slane %v381_v11, 1  ;;  %v422_v37 = vperm.slane %v382_v12, 1  ;;  %v423_v38 = vperm.slane %v383_v13, 1  ;;  %v424_v39 = vperm.slane %v384_v14, 1 }
  0x31   : > { %v425_v40 = vperm.slane %v385_v15, 1  ;;  %v426_v41 = vperm.slane %v386_v16, 1 }
  0x8f   : > { %v398_v17 = vpop.permute.xlu0 %397  ;;  %v446_v30 = vpop.permute.xlu1 %445 }
  0x90   : > { %v408_v43 = vmul.f32 %v400_v18, %v398_v17  ;;  %v409_v44 = vmul.f32 %v401_v19, %v398_v17  ;;  %v410_v45 = vmul.f32 %v402_v20, %v398_v17  ;;  %v411_v46 = vmul.f32 %v403_v21, %v398_v17 }
  0x91   : > { %v412_v47 = vmul.f32 %v404_v22, %v398_v17  ;;  %v413_v48 = vmul.f32 %v405_v23, %v398_v17  ;;  %v414_v49 = vmul.f32 %v406_v24, %v398_v17  ;;  %v415_v50 = vmul.f32 %v407_v25, %v398_v17 }
  0x92   : > { %v456_v51 = vmul.f32 %v448_v26, %v446_v30  ;;  %v457_v52 = vmul.f32 %v449_v27, %v446_v30  ;;  %v458_v53 = vmul.f32 %v450_v28, %v446_v30  ;;  %v459_v54 = vmul.f32 %v451_v29, %v446_v30 }
  0x93   : > { %v460_v55 = vmul.f32 %v452_v31, %v446_v30  ;;  %v461_v56 = vmul.f32 %v453_v32, %v446_v30  ;;  %v462_v57 = vmul.f32 %v454_v33, %v446_v30  ;;  %v463_v58 = vmul.f32 %v455_v34, %v446_v30 }
  0x98   : > { %v418_v59 = vpop.permute.xlu0 %417  ;;  %v476_v12 = vpop.permute.xlu1 %475 }
  0x99   : > { %v428_v60 = vmul.f32 %v420_v35, %v418_v59  ;;  %v429_v61 = vmul.f32 %v421_v36, %v418_v59  ;;  %v430_v62 = vmul.f32 %v422_v37, %v418_v59  ;;  %v431_v63 = vmul.f32 %v423_v38, %v418_v59 }
  0x9a   : > { %v432_v0 = vmul.f32 %v424_v39, %v418_v59  ;;  %v433_v1 = vmul.f32 %v425_v40, %v418_v59  ;;  %v434_v2 = vmul.f32 %v426_v41, %v418_v59  ;;  %v435_v3 = vmul.f32 %v427_v42, %v418_v59 }
  0x9b   : > { %v436_v4 = vadd.f32 %v428_v60, %v408_v43  ;;  %v437_v5 = vadd.f32 %v429_v61, %v409_v44  ;;  %v438_v6 = vadd.f32 %v430_v62, %v410_v45  ;;  %v439_v7 = vadd.f32 %v431_v63, %v411_v46 }
  0x9c   : > { %v440_v8 = vadd.f32 %v432_v0, %v412_v47  ;;  %v441_v9 = vadd.f32 %v433_v1, %v413_v48  ;;  %v442_v10 = vadd.f32 %v434_v2, %v414_v49  ;;  %v443_v11 = vadd.f32 %v435_v3, %v415_v50 }
  0x9d   : > { %v464_v13 = vadd.f32 %v456_v51, %v436_v4  ;;  %v465_v14 = vadd.f32 %v457_v52, %v437_v5  ;;  %v466_v15 = vadd.f32 %v458_v53, %v438_v6  ;;  %v467_v16 = vadd.f32 %v459_v54, %v439_v7 }
  0x9e   : > { %v468_v17 = vadd.f32 %v460_v55, %v440_v8  ;;  %v469_v18 = vadd.f32 %v461_v56, %v441_v9  ;;  %v470_v19 = vadd.f32 %v462_v57, %v442_v10  ;;  %v471_v20 = vadd.f32 %v463_v58, %v443_v11 }
  0x9f   : > { %v478_v21 = vadd.f32 %v476_v12, %v464_v13  ;;  %v479_v22 = vadd.f32 %v476_v12, %v465_v14  ;;  %v480_v23 = vadd.f32 %v476_v12, %v466_v15  ;;  %v481_v24 = vadd.f32 %v476_v12, %v467_v16 }
  0xa0   : > { %v482_v25 = vadd.f32 %v476_v12, %v468_v17  ;;  %v483_v26 = vadd.f32 %v476_v12, %v469_v18  ;;  %v484_v27 = vadd.f32 %v476_v12, %v470_v19  ;;  %v485_v28 = vadd.f32 %v476_v12, %v471_v20 }
  0xa1   : > { %v486_v29 = vmax.f32 %v478_v21, 0.0  ;;  %v487_v30 = vmax.f32 %v479_v22, 0.0  ;;  %v488_v31 = vmax.f32 %v480_v23, 0.0  ;;  %v489_v32 = vmax.f32 %v481_v24, 0.0 }
  0xa2   : > { %v490_v33 = vmax.f32 %v482_v25, 0.0  ;;  %v491_v34 = vmax.f32 %v483_v26, 0.0  ;;  %v492_v35 = vmax.f32 %v484_v27, 0.0  ;;  %v493_v36 = vmax.f32 %v485_v28, 0.0 }
  0xa3   : > { %v1930_v37 = vmin.f32 %v486_v29, 6.0  ;;  %v1932_v38 = vmin.f32 %v487_v30, 6.0  ;;  %v1934_v39 = vmin.f32 %v488_v31, 6.0  ;;  %v1936_v40 = vmin.f32 %v489_v32, 6.0 }
  0xa4   : > { %v1938_v41 = vmin.f32 %v490_v33, 6.0  ;;  %v1940_v42 = vmin.f32 %v491_v34, 6.0  ;;  %v1942_v43 = vmin.f32 %v492_v35, 6.0  ;;  %v1944_v44 = vmin.f32 %v493_v36, 6.0 }
  0xa5   : > { %v502_v45 = vrot.slane %v1930_v37, 4  ;;  %v508_v46 = vrot.slane %v1932_v38, 4  ;;  %v514_v47 = vrot.slane %v1934_v39, 4  ;;  %v520_v48 = vrot.slane %v1936_v40, 4 }
  0xa6   : > { %v526_v49 = vrot.slane %v1938_v41, 4  ;;  %v532_v50 = vrot.slane %v1940_v42, 4  ;;  %v538_v51 = vrot.slane %v1942_v43, 4  ;;  %v545_v52 = vsel %vm544_vm0, %v1944_v44, 0.0 }
  0xa7   : > { %v503_v53 = vadd.f32 %v502_v45, %v1930_v37  ;;  %v509_v54 = vadd.f32 %v508_v46, %v1932_v38  ;;  %v515_v55 = vadd.f32 %v514_v47, %v1934_v39  ;;  %v521_v56 = vadd.f32 %v520_v48, %v1936_v40 }
  0xa8   : > { %v527_v57 = vadd.f32 %v526_v49, %v1938_v41  ;;  %v539_v58 = vadd.f32 %v538_v51, %v1942_v43  ;;  %v546_v59 = vrot.slane %v545_v52, 4  ;;  %v533_v1 = vadd.f32 %v532_v50, %v1940_v42 }
  0xa9   : > { %v504_v60 = vrot.slane %v503_v53, 2  ;;  %v510_v61 = vrot.slane %v509_v54, 2  ;;  %v516_v62 = vrot.slane %v515_v55, 2  ;;  %v522_v63 = vrot.slane %v521_v56, 2 }
  0xaa   : > { %v528_v0 = vrot.slane %v527_v57, 2  ;;  %v540_v2 = vrot.slane %v539_v58, 2  ;;  %v547_v3 = vadd.f32 %v546_v59, %v545_v52  ;;  %v534_v14 = vrot.slane %v533_v1, 2 }
  0xab   : > { %v505_v4 = vadd.f32 %v504_v60, %v503_v53  ;;  %v511_v5 = vadd.f32 %v510_v61, %v509_v54  ;;  %v517_v6 = vadd.f32 %v516_v62, %v515_v55  ;;  %v523_v7 = vadd.f32 %v522_v63, %v521_v56 }
  0xac   : > { %v529_v8 = vadd.f32 %v528_v0, %v527_v57  ;;  %v541_v15 = vadd.f32 %v540_v2, %v539_v58  ;;  %v548_v16 = vrot.slane %v547_v3, 2  ;;  %v535_v25 = vadd.f32 %v534_v14, %v533_v1 }
  0xad   : > { %v506_v9 = vrot.slane %v505_v4, 1  ;;  %v512_v10 = vrot.slane %v511_v5, 1  ;;  %v518_v11 = vrot.slane %v517_v6, 1  ;;  %v524_v12 = vrot.slane %v523_v7, 1 }
  0xae   : > { %v530_v13 = vrot.slane %v529_v8, 1  ;;  %v549_v26 = vadd.f32 %v548_v16, %v547_v3  ;;  %v542_v27 = vrot.slane %v541_v15, 1  ;;  %v536_v30 = vrot.slane %v535_v25, 1 }
  0xaf   : > { %v507_v17 = vadd.f32 %v506_v9, %v505_v4  ;;  %v513_v18 = vadd.f32 %v512_v10, %v511_v5  ;;  %v519_v19 = vadd.f32 %v518_v11, %v517_v6  ;;  %v525_v20 = vadd.f32 %v524_v12, %v523_v7 }
  0xb0   : > { %v531_v21 = vadd.f32 %v530_v13, %v529_v8  ;;  %v550_v31 = vrot.slane %v549_v26, 1  ;;  %v543_v32 = vadd.f32 %v542_v27, %v541_v15  ;;  %v1975_v45 = vadd.f32 %v536_v30, %v535_v25 }
  0xb1   : > { %v552_v22 = vmax.f32 %v507_v17, 1e-12  ;;  %v553_v23 = vmax.f32 %v513_v18, 1e-12  ;;  %v1962_v24 = vmax.f32 %v519_v19, 1e-12 }
  0xb2   : > { %v1964_v28 = vmax.f32 %v525_v20, 1e-12  ;;  %v1966_v29 = vmax.f32 %v531_v21, 1e-12  ;;  %v1977_v46 = vadd.f32 %v550_v31, %v549_v26  ;;  %v1980_v49 = vmax.f32 %v543_v32, 1e-12 }
  0xb3   : > { %1655 = vrcp.f32 %v552_v22  ;;  %v569_v34 = vand.u32 2147483647, %v552_v22  ;;  %v571_v35 = vand.u32 2147483648, %v552_v22  ;;  %vm565_vm1 = vweird.f32 %v552_v22 }
  0xb4   : > { %1657 = vrcp.f32 %v553_v23  ;;  %vm580_vm2 = vweird.f32 %v553_v23  ;;  %v584_v52 = vand.u32 2147483647, %v553_v23  ;;  %v586_v53 = vand.u32 2147483648, %v553_v23 }
  0xb5   : > { %1659 = vrcp.f32 %v1962_v24  ;;  %vm1984_vm3 = vcmp.eq.f32.partialorder %v569_v34, 8.507059e+37  ;;  %v572_v57 = vor.u32 1.1754944e-38, %v571_v35  ;;  %vm595_vm4 = vweird.f32 %v1962_v24 }
  0xb6   : > { %1661 = vrcp.f32 %v1964_v28  ;;  %v599_v59 = vand.u32 2147483647, %v1962_v24  ;;  %vm2007_vm9 = vcmp.eq.f32.partialorder %v584_v52, 8.507059e+37  ;;  %v601_v8 = vand.u32 2147483648, %v1962_v24 }
  0xb7   : > { %1663 = vrcp.f32 %v1966_v29  ;;  %v616_v9 = vand.u32 2147483648, %v1964_v28  ;;  %v587_v15 = vor.u32 1.1754944e-38, %v586_v53  ;;  %vm610_vm13 = vweird.f32 %v1964_v28 }
  0xb8   : > { %1665 = vrcp.f32 %v1980_v49  ;;  %v614_v17 = vand.u32 2147483647, %v1964_v28  ;;  %vm600_vm14 = vcmp.eq.f32.partialorder %v599_v59, 8.507059e+37  ;;  %v631_v32 = vand.u32 2147483648, %v1966_v29 }
  0xb9   : > { %v1970_v33 = vpop.eup %1655  ;;  %v629_v34 = vand.u32 2147483647, %v1966_v29 }
  0xba   : > { %v1973_v36 = vpop.eup %1657  ;;  %v561_v47 = vmul.f32 %v1970_v33, %v552_v22  ;;  %vm566_vm5 = vweird.f32 %v1970_v33 }
  0xbb   : > { %v1660_v48 = vpop.eup %1659  ;;  %v576_v50 = vmul.f32 %v1973_v36, %v553_v23  ;;  %vm581_vm6 = vweird.f32 %v1973_v36  ;;  %vm2002_vm8 = vmor %vm565_vm1, %vm566_vm5  ;;  %v602_v23 = vor.u32 1.1754944e-38, %v601_v8  ;;  %vm615_vm1 = vcmp.eq.f32.partialorder %v614_v17, 8.507059e+37 }
  0xbc   : > { %v562_v51 = vsub.f32 1.0, %v561_v47  ;;  %v591_v54 = vmul.f32 %v1660_v48, %v1962_v24  ;;  %v1662_v55 = vpop.eup %1661  ;;  %vm596_vm7 = vweird.f32 %v1660_v48  ;;  %vm2014_vm10 = vmor %vm580_vm2, %vm581_vm6  ;;  %v617_v24 = vor.u32 1.1754944e-38, %v616_v9 }
  0xbd   : > { %v577_v58 = vsub.f32 1.0, %v576_v50  ;;  %v606_v62 = vmul.f32 %v1662_v55, %v1964_v28  ;;  %v1993_v63 = vpop.eup %1663  ;;  %vm611_vm11 = vweird.f32 %v1662_v55  ;;  %vm2024_vm12 = vmor %vm595_vm4, %vm596_vm7  ;;  %vm625_vm2 = vweird.f32 %v1966_v29 }
  0xbe   : > { %v563_v60 = vmul.f32 %v1970_v33, %v562_v51  ;;  %v592_v61 = vsub.f32 1.0, %v591_v54  ;;  %v621_v4 = vmul.f32 %v1993_v63, %v1966_v29  ;;  %v1666_v22 = vpop.eup %1665  ;;  %vm612_vm15 = vmor %vm610_vm13, %vm611_vm11  ;;  %vm626_vm0 = vweird.f32 %v1993_v63 }
  0xbf   : > { %v578_v0 = vmul.f32 %v1973_v36, %v577_v58  ;;  %v607_v3 = vsub.f32 1.0, %v606_v62  ;;  %v651_v28 = vmul.f32 %v1666_v22, %v1980_v49  ;;  %vm2046_vm4 = vmor %vm625_vm2, %vm626_vm0  ;;  %v659_v47 = vand.u32 2147483647, %v1980_v49 }
  0xc0   : > { %v564_v1 = vadd.f32 %v1970_v33, %v563_v60  ;;  %v593_v2 = vmul.f32 %v1660_v48, %v592_v61  ;;  %v622_v13 = vsub.f32 1.0, %v621_v4  ;;  %v557_v54 = vmax.f32 %v1975_v45, 1e-12 }
  0xc1   : > { %v579_v6 = vadd.f32 %v1973_v36, %v578_v0  ;;  %v608_v12 = vmul.f32 %v1662_v55, %v607_v3  ;;  %v652_v35 = vsub.f32 1.0, %v651_v28  ;;  %vm630_vm5 = vcmp.eq.f32.partialorder %v629_v34, 8.507059e+37 }
  0xc2   : > { %v594_v11 = vadd.f32 %v1660_v48, %v593_v2  ;;  %v568_v14 = vsel %vm2002_vm8, %v1970_v33, %v564_v1  ;;  %v623_v21 = vmul.f32 %v1993_v63, %v622_v13  ;;  %vm655_vm6 = vweird.f32 %v1980_v49 }
  0xc3   : > { %v583_v18 = vsel %vm2014_vm10, %v1973_v36, %v579_v6  ;;  %v609_v20 = vadd.f32 %v1662_v55, %v608_v12  ;;  %v573_v25 = vsel %vm1984_vm3, %v572_v57, %v568_v14  ;;  %vm656_vm3 = vweird.f32 %v1666_v22 }
  0xc4   : > { %v598_v19 = vsel %vm2024_vm12, %v1660_v48, %v594_v11  ;;  %v624_v27 = vadd.f32 %v1993_v63, %v623_v21  ;;  %v588_v30 = vsel %vm2007_vm9, %v587_v15, %v583_v18  ;;  %v661_v48 = vand.u32 2147483648, %v1980_v49  ;;  %vm657_vm7 = vmor %vm655_vm6, %vm656_vm3 }
  0xc5   : > { %v613_v26 = vsel %vm612_vm15, %v1662_v55, %v609_v20  ;;  %v603_v31 = vsel %vm600_vm14, %v602_v23, %v598_v19  ;;  %v2053_v50 = vmul.f32 %v573_v25, %v1930_v37  ;;  %v653_v52 = vmul.f32 %v1666_v22, %v652_v35 }
  0xc6   : > { %v618_v33 = vsel %vm615_vm1, %v617_v24, %v613_v26  ;;  %v628_v51 = vsel %vm2046_vm4, %v1993_v63, %v624_v27  ;;  %v2059_v29 = vmul.f32 %v588_v30, %v1932_v38  ;;  %v2062_v53 = vmul.f32 %v603_v31, %v1934_v39 }
  0xc7   : > { %v632_v55 = vor.u32 1.1754944e-38, %v631_v32  ;;  %v2066_v56 = vmul.f32 %v618_v33, %v1936_v40  ;;  %v654_v37 = vadd.f32 %v1666_v22, %v653_v52  ;;  %v662_v38 = vor.u32 1.1754944e-38, %v661_v48 }
  0xc8   : > { %v2071_v57 = vpack.i.bf16 %v2059_v29, %v2053_v50  ;;  %v559_v45 = vmax.f32 %v1977_v46, 1e-12  ;;  %vm660_vm8 = vcmp.eq.f32.partialorder %v659_v47, 8.507059e+37  ;;  %1667 = vrcp.f32 %v557_v54 }
  0xc9   : > { %v633_v58 = vsel %vm630_vm5, %v632_v55, %v628_v51  ;;  %v1523_v39 = vpack.i.bf16 %v2066_v56, %v2062_v53  ;;  %v658_v59 = vsel %vm657_vm7, %v1666_v22, %v654_v37  ;;  %vm640_vm11 = vweird.f32 %v557_v54 }
  0xca   : > { %1534 = vrot.lane.b32.xlu0 %v2071_v57, %s1795_s0  ;;  %v663_v40 = vsel %vm660_vm8, %v662_v38, %v658_v59  ;;  %v2082_v49 = vmul.f32 %v633_v58, %v1938_v41  ;;  %1669 = vrcp.f32 %v559_v45  ;;  %v646_v5 = vand.u32 2147483648, %v557_v54 }
  0xcb   : > { %1524 = vrot.lane.b32.xlu1 %v1523_v39, %s1796_s24  ;;  %1514 = vrot.lane.b32.xlu2 %v1523_v39, %s1795_s0  ;;  %v2085_v60 = vmul.f32 %v663_v40, %v1942_v43  ;;  %v676_v6 = vand.u32 2147483648, %v559_v45  ;;  %v644_v7 = vand.u32 2147483647, %v557_v54  ;;  %vm670_vm13 = vweird.f32 %v559_v45 }
  0xcc   : > { %v674_v8 = vand.u32 2147483647, %v559_v45  ;;  %v647_v11 = vor.u32 1.1754944e-38, %v646_v5  ;;  %vm929_vm1 = vcmask 982016   ;;  %vm898_vm2 = vcmask 990208  }
  0xcd   : > { %v2089_v46 = vpack.i.bf16 %v2085_v60, %v2082_v49  ;;  %v677_v12 = vor.u32 1.1754944e-38, %v676_v6  ;;  %vm645_vm15 = vcmp.eq.f32.partialorder %v644_v7, 8.507059e+37  ;;  %vm867_vm4 = vcmask 998400  }
  0xce   : > { %v1668_v61 = vpop.eup %1667  ;;  %vm675_vm0 = vcmp.eq.f32.partialorder %v674_v8, 8.507059e+37  ;;  %vm836_vm3 = vcmask 1006592   ;;  %vm805_vm5 = vcmask 1014784   ;;  %vm774_vm6 = vcmask 1022976  }
  0xcf   : > { %v636_v62 = vmul.f32 %v1668_v61, %v557_v54  ;;  %vm641_vm9 = vweird.f32 %v1668_v61  ;;  %vm743_vm7 = vcmask 1031168   ;;  %vm712_vm8 = vcmask 1039360  }
  0xd0   : > { %v1670_v41 = vpop.eup %1669  ;;  %vm642_vm12 = vmor %vm640_vm11, %vm641_vm9  ;;  %vm951_vm9 = vcmask 588800  }
  0xd1   : > { %v666_v43 = vmul.f32 %v1670_v41, %v559_v45  ;;  %v637_v63 = vsub.f32 1.0, %v636_v62  ;;  %vm671_vm10 = vweird.f32 %v1670_v41 }
  0xd2   : > { %1549 = vrot.lane.b32.xlu0 %v2089_v46, %s1795_s0  ;;  %vm672_vm14 = vmor %vm670_vm13, %vm671_vm10 }
  0xd3   : > { %1539 = vrot.lane.b32.xlu1 %v1523_v39, %s1797_s9  ;;  %1519 = vrot.lane.b32.xlu2 %v1523_v39, %s1798_s13  ;;  %v667_v0 = vsub.f32 1.0, %v666_v43  ;;  %v638_v1 = vmul.f32 %v1668_v61, %v637_v63 }
  0xd5   : > { %v668_v2 = vmul.f32 %v1670_v41, %v667_v0  ;;  %v639_v3 = vadd.f32 %v1668_v61, %v638_v1 }
  0xd7   : > { %v669_v4 = vadd.f32 %v1670_v41, %v668_v2  ;;  %v643_v9 = vsel %vm642_vm12, %v1668_v61, %v639_v3 }
  0xd8   : > { %v648_v13 = vsel %vm645_vm15, %v647_v11, %v643_v9 }
  0xd9   : > { %v673_v10 = vsel %vm672_vm14, %v1670_v41, %v669_v4  ;;  %v2109_v15 = vmul.f32 %v648_v13, %v1940_v42 }
  0xda   : > { %1559 = vrot.lane.b32.xlu0 %v2071_v57, %s1796_s24  ;;  %v678_v14 = vsel %vm675_vm0, %v677_v12, %v673_v10 }
  0xdb   : > { %1564 = vrot.lane.b32.xlu1 %v2089_v46, %s1798_s13  ;;  %1529 = vrot.lane.b32.xlu2 %v1523_v39, %s1799_s16  ;;  %v687_v16 = vmul.f32 %v678_v14, %v1944_v44 }
  0xdd   : > { %v1628_v17 = vpack.i.bf16 %v2109_v15, %v687_v16 }
  0xe2   : > { %1569 = vrot.lane.b32.xlu0 %v1523_v39, %s1800_s17 }
  0xe3   : > { %1574 = vrot.lane.b32.xlu1 %v2071_v57, %s1799_s16  ;;  %1544 = vrot.lane.b32.xlu2 %v2071_v57, %s1798_s13 }
  0xea   : > { %1594 = vrot.lane.b32.xlu0 %v2089_v46, %s1799_s16 }
  0xeb   : > { %1584 = vrot.lane.b32.xlu1 %v1523_v39, %s1801_s18  ;;  %1554 = vrot.lane.b32.xlu2 %v1523_v39, %s1802_s19 }
  0xf2   : > { %1604 = vrot.lane.b32.xlu0 %v2089_v46, %s1797_s9 }
  0xf3   : > { %1629 = vrot.lane.b32.xlu1 %v1628_v17, %s1795_s0  ;;  %1579 = vrot.lane.b32.xlu2 %v2089_v46, %s1796_s24  ;;  %s322_s0 = sand.u32 1, %s1766_s22  }
  0xfa   : > { %1614 = vrot.lane.b32.xlu0 %v2089_v46, %s1802_s19 }
  0xfb   : > { %799 = vrot.lane.b32.xlu1 %v2109_v15, %s1797_s9  ;;  %1589 = vrot.lane.b32.xlu2 %v2071_v57, %s1797_s9 }
 0x102   : > { %1624 = vrot.lane.b32.xlu0 %v2089_v46, %s1800_s17 }
 0x103   : > { %1649 = vrot.lane.b32.xlu1 %v1628_v17, %s1799_s16  ;;  %1599 = vrot.lane.b32.xlu2 %v2071_v57, %s1802_s19  ;;  %s1286_s16 = ssub.s32 (%p1890_p3), 8, %s1917_s20 }
 0x104   : > { %p1287_p1 = scmp.lt.s32.totalorder (%p1890_p3), %s1286_s16, 7 }
 0x10a   : > { %1644 = vrot.lane.b32.xlu0 %v1628_v17, %s1796_s24  ;;  %s1427_s24 = smul.u32 56, %s322_s0 }
 0x10b   : > { %803 = vrot.lane.b32.xlu1 %v687_v16, %s1797_s9  ;;  %1609 = vrot.lane.b32.xlu2 %v2071_v57, %s1800_s17 }
 0x10c   : > { %s2348_s9 = scalar_lea.vmem [#allocation2], %s1427_s24 }
 0x112   : > { %710 = vrot.lane.b32.xlu0 %v687_v16, %s1801_s18 }
 0x113   : > { %772 = vrot.lane.b32.xlu1 %v687_v16, %s1802_s19  ;;  %1619 = vrot.lane.b32.xlu2 %v2071_v57, %s1801_s18 }
 0x11a   : > { %737 = vrot.lane.b32.xlu0 %v2109_v15, %s1800_s17 }
 0x11b   : > { %741 = vrot.lane.b32.xlu1 %v687_v16, %s1800_s17  ;;  %1634 = vrot.lane.b32.xlu2 %v1628_v17, %s1798_s13  ;;  %s2385_s13 = scalar_lea.sflag [#allocation3], %s322_s0 }
 0x123   : > { %706 = vrot.lane.b32.xlu1 %v2109_v15, %s1801_s18  ;;  %1639 = vrot.lane.b32.xlu2 %v2089_v46, %s1801_s18 }
 0x125   : > { %v1515_v42 = vpop.permute.xlu2 %1514 }
 0x126   : > { %v1517_v44 = vunpack.i.h.bf16 %v1515_v42  ;;  %v1516_v18 = vunpack.i.l.bf16 %v1515_v42 }
 0x128   : > { %v932_v19 = vsel %vm929_vm1, %v1516_v18, %v1517_v44 }
 0x129   : > { %1002 = vmatpush.msra.mxu2 %v932_v19 }
 0x12b   : > { %768 = vrot.lane.b32.xlu2 %v2109_v15, %s1802_s19 }
 0x12d   : > { %v1520_v20 = vpop.permute.xlu2 %1519 }
 0x12e   : > { %v1522_v21 = vunpack.i.h.bf16 %v1520_v20  ;;  %v1521_v22 = vunpack.i.l.bf16 %v1520_v20 }
 0x130   : > { %v901_v23 = vsel %vm898_vm2, %v1521_v22, %v1522_v21 }
 0x131   : > { %1003 = vmatpush.msra.mxu2 %v901_v23 }
 0x135   : > { %v2145_v24 = vpop.permute.xlu2 %1529 }
 0x136   : > { %v1532_v26 = vunpack.i.h.bf16 %v2145_v24  ;;  %v1531_v27 = vunpack.i.l.bf16 %v2145_v24 }
 0x138   : > { %v839_v55 = vsel %vm836_vm3, %v1531_v27, %v1532_v26 }
 0x13c   : > { %v1535_v25 = vpop.permute.xlu0 %1534 }
 0x13d   : > { %v1525_v28 = vpop.permute.xlu1 %1524  ;;  %v1545_v30 = vpop.permute.xlu2 %1544  ;;  %v1537_v31 = vunpack.i.h.bf16 %v1535_v25  ;;  %v1536_v32 = vunpack.i.l.bf16 %v1535_v25 }
 0x13e   : > { %v1527_v33 = vunpack.i.h.bf16 %v1525_v28  ;;  %v1526_v34 = vunpack.i.l.bf16 %v1525_v28  ;;  %v1547_v35 = vunpack.i.h.bf16 %v1545_v30  ;;  %v1546_v36 = vunpack.i.l.bf16 %v1545_v30 }
 0x13f   : > { %v930_v47 = vsel %vm929_vm1, %v1536_v32, %v1537_v31  ;;  %v931_v48 = vsel %vm929_vm1, %v1537_v31, %v1516_v18 }
 0x140   : > { %962 = vmatpush.msra.mxu0 %v930_v47  ;;  %982 = vmatpush.msra.mxu1 %v931_v48  ;;  %v870_v51 = vsel %vm867_vm4, %v1526_v34, %v1527_v33  ;;  %v899_v52 = vsel %vm898_vm2, %v1546_v36, %v1547_v35  ;;  %v900_v54 = vsel %vm898_vm2, %v1547_v35, %v1521_v22  ;;  %v2226_v36 = vld [vmem:[%s2481_s2] sm:$0xff] }
 0x141   : > { %1004 = vmatpush.msra.mxu2 %v870_v51 }
 0x142   : > { %963 = vmatpush.msra.mxu0 %v899_v52  ;;  %983 = vmatpush.msra.mxu1 %v900_v54 }
 0x143   : > { %1005 = vmatpush.msra.mxu2 %v839_v55 }
 0x144   : > { %v2159_v37 = vpop.permute.xlu0 %1549 }
 0x145   : > { %v2161_v57 = vpop.permute.xlu1 %1539  ;;  %v2163_v58 = vpop.permute.xlu2 %1554  ;;  %v1551_v38 = vunpack.i.l.bf16 %v2159_v37  ;;  %v1552_v51 = vunpack.i.h.bf16 %v2159_v37 }
 0x146   : > { %v1542_v39 = vunpack.i.h.bf16 %v2161_v57  ;;  %v1541_v45 = vunpack.i.l.bf16 %v2161_v57  ;;  %v1557_v59 = vunpack.i.h.bf16 %v2163_v58  ;;  %v1556_v40 = vunpack.i.l.bf16 %v2163_v58 }
 0x147   : > { %v933_v46 = vsel %vm929_vm1, %v1517_v44, %v1551_v38 }
 0x148   : > { %v808_v61 = vsel %vm805_vm5, %v1541_v45, %v1542_v39  ;;  %1022 = vmatpush.msra.mxu3 %v933_v46  ;;  %v777_v41 = vsel %vm774_vm6, %v1556_v40, %v1557_v59 }
 0x149   : > { %1006 = vmatpush.msra.mxu2 %v808_v61 }
 0x14b   : > { %1007 = vmatpush.msra.mxu2 %v777_v41 }
 0x14c   : > { %v1560_v62 = vpop.permute.xlu0 %1559 }
 0x14d   : > { %v2179_v43 = vpop.permute.xlu1 %1564  ;;  %v2181_v63 = vpop.permute.xlu2 %1579  ;;  %v1562_v0 = vunpack.i.h.bf16 %v1560_v62  ;;  %v1561_v1 = vunpack.i.l.bf16 %v1560_v62 }
 0x14e   : > { %v1566_v2 = vunpack.i.l.bf16 %v2179_v43  ;;  %v1581_v3 = vunpack.i.l.bf16 %v2181_v63 }
 0x14f   : > { %v868_v4 = vsel %vm867_vm4, %v1561_v1, %v1562_v0  ;;  %v869_v5 = vsel %vm867_vm4, %v1562_v0, %v1526_v34 }
 0x150   : > { %964 = vmatpush.msra.mxu0 %v868_v4  ;;  %984 = vmatpush.msra.mxu1 %v869_v5  ;;  %v902_v6 = vsel %vm898_vm2, %v1522_v21, %v1566_v2  ;;  %v871_v7 = vsel %vm867_vm4, %v1527_v33, %v1581_v3 }
 0x151   : > { %1023 = vmatpush.msra.mxu3 %v902_v6 }
 0x153   : > { %1024 = vmatpush.msra.mxu3 %v871_v7 }
 0x154   : > { %v2193_v8 = vpop.permute.xlu0 %1569 }
 0x155   : > { %v1575_v9 = vpop.permute.xlu1 %1574  ;;  %v1590_v10 = vpop.permute.xlu2 %1589  ;;  %v1572_v11 = vunpack.i.h.bf16 %v2193_v8  ;;  %v1571_v12 = vunpack.i.l.bf16 %v2193_v8 }
 0x156   : > { %v1577_v13 = vunpack.i.h.bf16 %v1575_v9  ;;  %v1576_v14 = vunpack.i.l.bf16 %v1575_v9  ;;  %v1592_v16 = vunpack.i.h.bf16 %v1590_v10  ;;  %v1591_v17 = vunpack.i.l.bf16 %v1590_v10  ;;  %v945_v10 = vld [vmem:[%s2482_s3] sm:$0xff] }
 0x157   : > { %v746_v42 = vsel %vm743_vm7, %v1571_v12, %v1572_v11  ;;  %948 = vperm.xlu2 %1653, %v945_v10  }
 0x158   : > { %v837_v44 = vsel %vm836_vm3, %v1576_v14, %v1577_v13  ;;  %v838_v18 = vsel %vm836_vm3, %v1577_v13, %v1531_v27  ;;  %1008 = vmatpush.msra.mxu2 %v746_v42  ;;  %v806_v19 = vsel %vm805_vm5, %v1591_v17, %v1592_v16  ;;  %v807_v20 = vsel %vm805_vm5, %v1592_v16, %v1541_v45 }
 0x159   : > { %965 = vmatpush.msra.mxu0 %v837_v44  ;;  %985 = vmatpush.msra.mxu1 %v838_v18  ;;  %v1582_v44 = vunpack.i.h.bf16 %v2181_v63 }
 0x15b   : > { %966 = vmatpush.msra.mxu0 %v806_v19  ;;  %986 = vmatpush.msra.mxu1 %v807_v20 }
 0x15c   : > { %v2206_v21 = vpop.permute.xlu0 %1594 }
 0x15d   : > { %v2208_v22 = vpop.permute.xlu1 %1584  ;;  %v1600_v23 = vpop.permute.xlu2 %1599  ;;  %v1596_v25 = vunpack.i.l.bf16 %v2206_v21 }
 0x15e   : > { %v1587_v28 = vunpack.i.h.bf16 %v2208_v22  ;;  %v1586_v27 = vunpack.i.l.bf16 %v2208_v22  ;;  %v1602_v30 = vunpack.i.h.bf16 %v1600_v23  ;;  %v1601_v31 = vunpack.i.l.bf16 %v1600_v23 }
 0x15f   : > { %v840_v32 = vsel %vm836_vm3, %v1532_v26, %v1596_v25 }
 0x160   : > { %v775_v33 = vsel %vm774_vm6, %v1601_v31, %v1602_v30  ;;  %v776_v34 = vsel %vm774_vm6, %v1602_v30, %v1556_v40  ;;  %v715_v35 = vsel %vm712_vm8, %v1586_v27, %v1587_v28  ;;  %1025 = vmatpush.msra.mxu3 %v840_v32 }
 0x161   : > { %967 = vmatpush.msra.mxu0 %v775_v33  ;;  %987 = vmatpush.msra.mxu1 %v776_v34 }
 0x162   : > { %1009 = vmatpush.msra.mxu2 %v715_v35 }
 0x164   : > { %1010 = vmatpush.msra.mxu2 %v2062_v53  ;;  %v2229_v24 = vpop.permute.xlu0 %1604 }
 0x165   : > { %v1630_v26 = vpop.permute.xlu1 %1629  ;;  %v1610_v47 = vpop.permute.xlu2 %1609  ;;  %v1606_v48 = vunpack.i.l.bf16 %v2229_v24  ;;  %1414 = vmatmul.msk.f32.vlgmr.msra.gmra.mxu2 %vm951_vm9, %v2226_v36 }
 0x166   : > { %v1631_v52 = vunpack.i.l.bf16 %v1630_v26  ;;  %v1612_v54 = vunpack.i.h.bf16 %v1610_v47  ;;  %v1611_v55 = vunpack.i.l.bf16 %v1610_v47  ;;  %v1632_v4 = vunpack.i.h.bf16 %v1630_v26 }
 0x167   : > { %v809_v53 = vsel %vm805_vm5, %v1542_v39, %v1606_v48 }
 0x168   : > { %v744_v45 = vsel %vm743_vm7, %v1611_v55, %v1612_v54  ;;  %v745_v40 = vsel %vm743_vm7, %v1612_v54, %v1571_v12  ;;  %1026 = vmatpush.msra.mxu3 %v809_v53  ;;  %v936_v46 = vsel %vm929_vm1, %v1552_v51, %v1631_v52  ;;  %v934_v58 = vsel %vm929_vm1, %v1551_v38, %v1632_v4 }
 0x169   : > { %968 = vmatpush.msra.mxu0 %v744_v45  ;;  %988 = vmatpush.msra.mxu1 %v745_v40  ;;  %v1567_v12 = vunpack.i.h.bf16 %v2179_v43  ;;  %v1597_v43 = vunpack.i.h.bf16 %v2206_v21 }
 0x16a   : > { %1082 = vmatpush.msrb.mxu2 %v936_v46 }
 0x16c   : > { %v2243_v61 = vpop.permute.xlu0 %1614 }
 0x16d   : > { %v2245_v41 = vpop.permute.xlu1 %799  ;;  %v1620_v62 = vpop.permute.xlu2 %1619  ;;  %v1616_v0 = vunpack.i.l.bf16 %v2243_v61  ;;  %v1617_v21 = vunpack.i.h.bf16 %v2243_v61 }
 0x16e   : > { %v1622_v57 = vunpack.i.h.bf16 %v1620_v62  ;;  %v1621_v1 = vunpack.i.l.bf16 %v1620_v62  ;;  %v810_v22 = vsel %vm805_vm5, %v1606_v48, %v2245_v41 }
 0x16f   : > { %v778_v39 = vsel %vm774_vm6, %v1557_v59, %v1616_v0  ;;  %v935_v59 = vsel %vm929_vm1, %v1632_v4, %v1552_v51 }
 0x170   : > { %v713_v5 = vsel %vm712_vm8, %v1621_v1, %v1622_v57  ;;  %v714_v6 = vsel %vm712_vm8, %v1622_v57, %v1586_v27  ;;  %1027 = vmatpush.msra.mxu3 %v778_v39 }
 0x171   : > { %969 = vmatpush.msra.mxu0 %v713_v5  ;;  %989 = vmatpush.msra.mxu1 %v714_v6 }
 0x173   : > { %970 = vmatpush.msra.mxu0 %v2053_v50  ;;  %990 = vmatpush.msra.mxu1 %v2059_v29 }
 0x174   : > { %1412 = vmatmul.msk.f32.vlgmr.msra.gmra.mxu0 %vm951_vm9, %v2226_v36  ;;  %1413 = vmatmul.msk.f32.vlgmr.msra.gmra.mxu1 %vm951_vm9, %v2226_v36  ;;  %v2265_v7 = vpop.permute.xlu0 %1624 }
 0x175   : > { %1042 = vmatpush.msrb.mxu0 %v934_v58  ;;  %1062 = vmatpush.msrb.mxu1 %v935_v59  ;;  %v1650_v9 = vpop.permute.xlu1 %1649  ;;  %v1635_v50 = vpop.permute.xlu2 %1634  ;;  %v1626_v29 = vunpack.i.l.bf16 %v2265_v7  ;;  %v1627_v51 = vunpack.i.h.bf16 %v2265_v7 }
 0x176   : > { %v1637_v13 = vunpack.i.h.bf16 %v1635_v50  ;;  %v1636_v37 = vunpack.i.l.bf16 %v1635_v50  ;;  %v1652_v18 = vunpack.i.h.bf16 %v1650_v9  ;;  %v1651_v23 = vunpack.i.l.bf16 %v1650_v9 }
 0x177   : > { %v747_v38 = vsel %vm743_vm7, %v1572_v11, %v1626_v29 }
 0x178   : > { %1028 = vmatpush.msra.mxu3 %v747_v38  ;;  %v903_v14 = vsel %vm898_vm2, %v1566_v2, %v1637_v13  ;;  %v904_v16 = vsel %vm898_vm2, %v1637_v13, %v1567_v12  ;;  %v905_v17 = vsel %vm898_vm2, %v1567_v12, %v1636_v37  ;;  %v841_v33 = vsel %vm836_vm3, %v1596_v25, %v1652_v18 }
 0x179   : > { %1043 = vmatpush.msrb.mxu0 %v903_v14  ;;  %1063 = vmatpush.msrb.mxu1 %v904_v16  ;;  %v842_v63 = vsel %vm836_vm3, %v1652_v18, %v1597_v43  ;;  %v843_v34 = vsel %vm836_vm3, %v1597_v43, %v1651_v23 }
 0x17a   : > { %1083 = vmatpush.msrb.mxu2 %v905_v17 }
 0x17c   : > { %v1645_v42 = vpop.permute.xlu0 %1644 }
 0x17d   : > { %v804_v19 = vpop.permute.xlu1 %803  ;;  %v1640_v8 = vpop.permute.xlu2 %1639  ;;  %v1647_v20 = vunpack.i.h.bf16 %v1645_v42  ;;  %v1646_v11 = vunpack.i.l.bf16 %v1645_v42 }
 0x17e   : > { %v1641_v27 = vunpack.i.l.bf16 %v1640_v8  ;;  %v1642_v45 = vunpack.i.h.bf16 %v1640_v8 }
 0x17f   : > { %v872_v2 = vsel %vm867_vm4, %v1581_v3, %v1647_v20  ;;  %v873_v30 = vsel %vm867_vm4, %v1647_v20, %v1582_v44  ;;  %v874_v31 = vsel %vm867_vm4, %v1582_v44, %v1646_v11  ;;  %v1607_v3 = vunpack.i.h.bf16 %v2229_v24 }
 0x180   : > { %v716_v32 = vsel %vm712_vm8, %v1587_v28, %v1641_v27  ;;  %1044 = vmatpush.msrb.mxu0 %v872_v2  ;;  %1064 = vmatpush.msrb.mxu1 %v873_v30 }
 0x181   : > { %1029 = vmatpush.msra.mxu3 %v716_v32  ;;  %1084 = vmatpush.msrb.mxu2 %v874_v31  ;;  %v811_v28 = vsel %vm805_vm5, %v2245_v41, %v1607_v3  ;;  %v812_v35 = vsel %vm805_vm5, %v1607_v3, %v804_v19 }
 0x182   : > { %1045 = vmatpush.msrb.mxu0 %v841_v33  ;;  %1065 = vmatpush.msrb.mxu1 %v842_v63 }
 0x183   : > { %1030 = vmatpush.msra.mxu3 %v2066_v56  ;;  %1085 = vmatpush.msrb.mxu2 %v843_v34 }
 0x184   : > { %1415 = vmatmul.msk.f32.vlgmr.msra.gmra.mxu3 %vm951_vm9, %v2226_v36  ;;  %v711_v25 = vpop.permute.xlu0 %710  ;;  %1046 = vmatpush.msrb.mxu0 %v810_v22 }
 0x185   : > { %v773_v26 = vpop.permute.xlu1 %772  ;;  %v769_v56 = vpop.permute.xlu2 %768  ;;  %1066 = vmatpush.msrb.mxu1 %v811_v28  ;;  %1086 = vmatpush.msrb.mxu2 %v812_v35  ;;  %v719_v46 = vsel %vm712_vm8, %v1642_v45, %v711_v25 }
 0x186   : > { %v779_v24 = vsel %vm774_vm6, %v1616_v0, %v769_v56  ;;  %v780_v47 = vsel %vm774_vm6, %v769_v56, %v1617_v21  ;;  %v781_v48 = vsel %vm774_vm6, %v1617_v21, %v773_v26 }
 0x187   : > { %1047 = vmatpush.msrb.mxu0 %v779_v24  ;;  %1067 = vmatpush.msrb.mxu1 %v780_v47 }
 0x188   : > { %1087 = vmatpush.msrb.mxu2 %v781_v48 }
 0x18c   : > { %v738_v52 = vpop.permute.xlu0 %737 }
 0x18d   : > { %v742_v54 = vpop.permute.xlu1 %741  ;;  %v748_v55 = vsel %vm743_vm7, %v1626_v29, %v738_v52  ;;  %v749_v53 = vsel %vm743_vm7, %v738_v52, %v1627_v51 }
 0x18e   : > { %1048 = vmatpush.msrb.mxu0 %v748_v55  ;;  %1068 = vmatpush.msrb.mxu1 %v749_v53  ;;  %v750_v40 = vsel %vm743_vm7, %v1627_v51, %v742_v54 }
 0x18f   : > { %1088 = vmatpush.msrb.mxu2 %v750_v40 }
 0x191   : > { %1089 = vmatpush.msrb.mxu2 %v719_v46 }
 0x193   : > { %1090 = vmatpush.msrb.mxu2 %v2085_v60 }
 0x194   : > { %1418 = vmatmul.msk.f32.vlgmr.msrb.gmra.mxu2 %vm951_vm9, %v2226_v36 }
 0x195   : > { %v707_v61 = vpop.permute.xlu1 %706 }
 0x196   : > { %v717_v41 = vsel %vm712_vm8, %v1641_v27, %v707_v61  ;;  %v718_v62 = vsel %vm712_vm8, %v707_v61, %v1642_v45 }
 0x197   : > { %1049 = vmatpush.msrb.mxu0 %v717_v41  ;;  %1069 = vmatpush.msrb.mxu1 %v718_v62 }
 0x199   : > { %1050 = vmatpush.msrb.mxu0 %v2082_v49  ;;  %1070 = vmatpush.msrb.mxu1 %v2109_v15 }
 0x19a   : > { %1416 = vmatmul.msk.f32.vlgmr.msrb.gmra.mxu0 %vm951_vm9, %v2226_v36  ;;  %1417 = vmatmul.msk.f32.vlgmr.msrb.gmra.mxu1 %vm951_vm9, %v2226_v36 }
 0x1b1   : > { %v2329_v60 = vpop.permute.xlu2 %948 }
 0x1e8   : > { %v1012_v0 = vpop.f32.mrf.mxu2 }
 0x1e9   : > { %v1013_v57 = vadd.f32 %v1012_v0, %v2329_v60 }
 0x1eb   : > { %v1097_v1 = vmax.f32 %v1013_v57, 0.0 }
 0x1ed   : > { %v1104_v39 = vmin.f32 %v1097_v1, 6.0 }
 0x1ef   : > { %v1121_v4 = vrot.slane %v1104_v39, 4 }
 0x1f1   : > { %v1122_v5 = vadd.f32 %v1121_v4, %v1104_v39  ;;  %v972_v6 = vpop.f32.mrf.mxu0  ;;  %v992_v58 = vpop.f32.mrf.mxu1 }
 0x1f2   : > { %v973_v49 = vadd.f32 %v972_v6, %v2329_v60  ;;  %v993_v15 = vadd.f32 %v992_v58, %v2329_v60 }
 0x1f3   : > { %v1123_v59 = vrot.slane %v1122_v5, 2 }
 0x1f4   : > { %v1095_v7 = vmax.f32 %v973_v49, 0.0  ;;  %v1096_v9 = vmax.f32 %v993_v15, 0.0 }
 0x1f5   : > { %v1124_v50 = vadd.f32 %v1123_v59, %v1122_v5 }
 0x1f6   : > { %v2334_v36 = vmin.f32 %v1095_v7, 6.0  ;;  %v2336_v29 = vmin.f32 %v1096_v9, 6.0 }
 0x1f7   : > { %v1125_v10 = vrot.slane %v1124_v50, 1 }
 0x1f8   : > { %v1109_v12 = vrot.slane %v2334_v36, 4  ;;  %v1115_v13 = vrot.slane %v2336_v29, 4 }
 0x1f9   : > { %v1126_v37 = vadd.f32 %v1125_v10, %v1124_v50 }
 0x1fa   : > { %v1110_v38 = vadd.f32 %v1109_v12, %v2334_v36  ;;  %v1116_v14 = vadd.f32 %v1115_v13, %v2336_v29 }
 0x1fb   : > { %v1153_v16 = vmax.f32 %v1126_v37, 1e-12 }
 0x1fc   : > { %v1111_v17 = vrot.slane %v1110_v38, 2  ;;  %v1117_v42 = vrot.slane %v1116_v14, 2 }
 0x1fd   : > { %1671 = vrcp.f32 %v1153_v16  ;;  %vm1193_vm10 = vweird.f32 %v1153_v16  ;;  %v1199_v30 = vand.u32 2147483648, %v1153_v16  ;;  %v1197_v32 = vand.u32 2147483647, %v1153_v16 }
 0x1fe   : > { %v1112_v44 = vadd.f32 %v1111_v17, %v1110_v38  ;;  %v1118_v18 = vadd.f32 %v1117_v42, %v1116_v14 }
 0x1ff   : > { %v1200_v34 = vor.u32 1.1754944e-38, %v1199_v30  ;;  %vm1198_vm13 = vcmp.eq.f32.partialorder %v1197_v32, 8.507059e+37 }
 0x200   : > { %v1113_v19 = vrot.slane %v1112_v44, 1  ;;  %v1119_v8 = vrot.slane %v1118_v18, 1 }
 0x202   : > { %v1114_v20 = vadd.f32 %v1113_v19, %v1112_v44  ;;  %v1120_v11 = vadd.f32 %v1119_v8, %v1118_v18 }
 0x203   : > { %v1672_v23 = vpop.eup %1671 }
 0x204   : > { %v1189_v27 = vmul.f32 %v1672_v23, %v1153_v16  ;;  %v1151_v43 = vmax.f32 %v1114_v20, 1e-12  ;;  %v1152_v2 = vmax.f32 %v1120_v11, 1e-12  ;;  %vm1194_vm11 = vweird.f32 %v1672_v23 }
 0x205   : > { %vm1195_vm12 = vmor %vm1193_vm10, %vm1194_vm11 }
 0x206   : > { %v1190_v31 = vsub.f32 1.0, %v1189_v27  ;;  %1673 = vrcp.f32 %v1151_v43  ;;  %vm1163_vm14 = vweird.f32 %v1151_v43  ;;  %v1167_v47 = vand.u32 2147483647, %v1151_v43 }
 0x207   : > { %1675 = vrcp.f32 %v1152_v2  ;;  %v1032_v33 = vpop.f32.mrf.mxu3  ;;  %v1169_v51 = vand.u32 2147483648, %v1151_v43  ;;  %vm1178_vm0 = vweird.f32 %v1152_v2  ;;  %v1184_v53 = vand.u32 2147483648, %v1152_v2 }
 0x208   : > { %v1191_v63 = vmul.f32 %v1672_v23, %v1190_v31  ;;  %v1033_v3 = vadd.f32 %v1032_v33, %v2329_v60  ;;  %v1182_v40 = vand.u32 2147483647, %v1152_v2  ;;  %vm1168_vm4 = vcmp.eq.f32.partialorder %v1167_v47, 8.507059e+37 }
 0x209   : > { %v1170_v41 = vor.u32 1.1754944e-38, %v1169_v51  ;;  %v1185_v1 = vor.u32 1.1754944e-38, %v1184_v53 }
 0x20a   : > { %v1192_v22 = vadd.f32 %v1672_v23, %v1191_v63  ;;  %v1098_v21 = vmax.f32 %v1033_v3, 0.0  ;;  %vm1183_vm5 = vcmp.eq.f32.partialorder %v1182_v40, 8.507059e+37 }
 0x20c   : > { %v1674_v25 = vpop.eup %1673  ;;  %v1196_v28 = vsel %vm1195_vm12, %v1672_v23, %v1192_v22  ;;  %v2345_v35 = vmin.f32 %v1098_v21, 6.0 }
 0x20d   : > { %v1676_v26 = vpop.eup %1675  ;;  %v1201_v56 = vsel %vm1198_vm13, %v1200_v34, %v1196_v28  ;;  %v1159_v24 = vmul.f32 %v1674_v25, %v1151_v43  ;;  %vm1164_vm15 = vweird.f32 %v1674_v25 }
 0x20e   : > { %v1265_v48 = vmul.f32 %v1201_v56, %v1104_v39  ;;  %v1174_v52 = vmul.f32 %v1676_v26, %v1152_v2  ;;  %v1127_v54 = vrot.slane %v2345_v35, 4  ;;  %vm1179_vm1 = vweird.f32 %v1676_v26  ;;  %vm1165_vm2 = vmor %vm1163_vm14, %vm1164_vm15 }
 0x20f   : > { %v1160_v55 = vsub.f32 1.0, %v1159_v24  ;;  %vm1180_vm3 = vmor %vm1178_vm0, %vm1179_vm1 }
 0x210   : > { %1272 = vst [vmem:[%s2348_s9 + $0x10] sm:$0xff] %v1265_v48  ;;  %v1175_v45 = vsub.f32 1.0, %v1174_v52  ;;  %v1128_v46 = vadd.f32 %v1127_v54, %v2345_v35 }
 0x211   : > { %v1161_v61 = vmul.f32 %v1674_v25, %v1160_v55 }
 0x212   : > { %v1176_v62 = vmul.f32 %v1676_v26, %v1175_v45  ;;  %v1129_v0 = vrot.slane %v1128_v46, 2 }
 0x213   : > { %v1162_v57 = vadd.f32 %v1674_v25, %v1161_v61 }
 0x214   : > { %v1177_v39 = vadd.f32 %v1676_v26, %v1176_v62  ;;  %v1130_v4 = vadd.f32 %v1129_v0, %v1128_v46 }
 0x215   : > { %v1166_v5 = vsel %vm1165_vm2, %v1674_v25, %v1162_v57 }
 0x216   : > { %v1171_v6 = vsel %vm1168_vm4, %v1170_v41, %v1166_v5  ;;  %v1181_v58 = vsel %vm1180_vm3, %v1676_v26, %v1177_v39  ;;  %v1131_v49 = vrot.slane %v1130_v4, 1 }
 0x217   : > { %v1263_v15 = vmul.f32 %v1171_v6, %v2334_v36  ;;  %v1186_v59 = vsel %vm1183_vm5, %v1185_v1, %v1181_v58  ;;  %v1052_v7 = vpop.f32.mrf.mxu0  ;;  %v1072_v9 = vpop.f32.mrf.mxu1 }
 0x218   : > { %v1264_v50 = vmul.f32 %v1186_v59, %v2336_v29  ;;  %v1132_v10 = vadd.f32 %v1131_v49, %v1130_v4  ;;  %v1053_v12 = vadd.f32 %v1052_v7, %v2329_v60  ;;  %v1073_v13 = vadd.f32 %v1072_v9, %v2329_v60  ;;  %v1092_v37 = vpop.f32.mrf.mxu2 }
 0x219   : > { %1270 = vst [vmem:[%s2348_s9] sm:$0xff] %v1263_v15  ;;  %v1093_v38 = vadd.f32 %v1092_v37, %v2329_v60 }
 0x21a   : > { %1271 = vst [vmem:[%s2348_s9 + $0x8] sm:$0xff] %v1264_v50  ;;  %v1154_v14 = vmax.f32 %v1132_v10, 1e-12  ;;  %v1099_v16 = vmax.f32 %v1053_v12, 0.0  ;;  %v1100_v17 = vmax.f32 %v1073_v13, 0.0 }
 0x21b   : > { %v1101_v42 = vmax.f32 %v1093_v38, 0.0 }
 0x21c   : > { %1677 = vrcp.f32 %v1154_v14  ;;  %v2361_v36 = vmin.f32 %v1099_v16, 6.0  ;;  %v2363_v44 = vmin.f32 %v1100_v17, 6.0  ;;  %vm1208_vm6 = vweird.f32 %v1154_v14 }
 0x21d   : > { %v2365_v29 = vmin.f32 %v1101_v42, 6.0  ;;  %v1212_v63 = vand.u32 2147483647, %v1154_v14  ;;  %v1214_v3 = vand.u32 2147483648, %v1154_v14 }
 0x21e   : > { %v1133_v18 = vrot.slane %v2361_v36, 4  ;;  %v1139_v19 = vrot.slane %v2363_v44, 4 }
 0x21f   : > { %v1145_v8 = vrot.slane %v2365_v29, 4  ;;  %v1215_v47 = vor.u32 1.1754944e-38, %v1214_v3  ;;  %vm1213_vm9 = vcmp.eq.f32.partialorder %v1212_v63, 8.507059e+37 }
 0x220   : > { %v1134_v60 = vadd.f32 %v1133_v18, %v2361_v36  ;;  %v1140_v20 = vadd.f32 %v1139_v19, %v2363_v44 }
 0x221   : > { %v1146_v11 = vadd.f32 %v1145_v8, %v2365_v29 }
 0x222   : > { %v1678_v23 = vpop.eup %1677  ;;  %v1135_v43 = vrot.slane %v1134_v60, 2  ;;  %v1141_v2 = vrot.slane %v1140_v20, 2 }
 0x223   : > { %v1204_v27 = vmul.f32 %v1678_v23, %v1154_v14  ;;  %v1147_v30 = vrot.slane %v1146_v11, 2  ;;  %vm1209_vm7 = vweird.f32 %v1678_v23 }
 0x224   : > { %v1136_v32 = vadd.f32 %v1135_v43, %v1134_v60  ;;  %v1142_v33 = vadd.f32 %v1141_v2, %v1140_v20  ;;  %vm1210_vm8 = vmor %vm1208_vm6, %vm1209_vm7 }
 0x225   : > { %v1205_v31 = vsub.f32 1.0, %v1204_v27  ;;  %v1148_v34 = vadd.f32 %v1147_v30, %v1146_v11 }
 0x226   : > { %v1137_v21 = vrot.slane %v1136_v32, 1  ;;  %v1143_v25 = vrot.slane %v1142_v33, 1 }
 0x227   : > { %v1206_v22 = vmul.f32 %v1678_v23, %v1205_v31  ;;  %v1149_v28 = vrot.slane %v1148_v34, 1 }
 0x228   : > { %v1138_v56 = vadd.f32 %v1137_v21, %v1136_v32  ;;  %v1144_v24 = vadd.f32 %v1143_v25, %v1142_v33 }
 0x229   : > { %v1207_v26 = vadd.f32 %v1678_v23, %v1206_v22  ;;  %v1150_v48 = vadd.f32 %v1149_v28, %v1148_v34 }
 0x22a   : > { %v1155_v52 = vmax.f32 %v1138_v56, 1e-12  ;;  %v1156_v54 = vmax.f32 %v1144_v24, 1e-12 }
 0x22b   : > { %v1211_v51 = vsel %vm1210_vm8, %v1678_v23, %v1207_v26  ;;  %v1157_v53 = vmax.f32 %v1150_v48, 1e-12 }
 0x22c   : > { %v1216_v55 = vsel %vm1213_vm9, %v1215_v47, %v1211_v51  ;;  %1679 = vrcp.f32 %v1155_v52  ;;  %vm1223_vm10 = vweird.f32 %v1155_v52  ;;  %v1227_v1 = vand.u32 2147483647, %v1155_v52 }
 0x22d   : > { %v1266_v45 = vmul.f32 %v1216_v55, %v2345_v35  ;;  %1681 = vrcp.f32 %v1156_v54  ;;  %v1229_v39 = vand.u32 2147483648, %v1155_v52  ;;  %v1244_v6 = vand.u32 2147483648, %v1156_v54 }
 0x22e   : > { %1683 = vrcp.f32 %v1157_v53  ;;  %v1242_v49 = vand.u32 2147483647, %v1156_v54  ;;  %v1259_v15 = vand.u32 2147483648, %v1157_v53  ;;  %v1257_v9 = vand.u32 2147483647, %v1157_v53 }
 0x22f   : > { %1273 = vst [vmem:[%s2348_s9 + $0x18] sm:$0xff] %v1266_v45  ;;  %vm1228_vm15 = vcmp.eq.f32.partialorder %v1227_v1, 8.507059e+37  ;;  %v1230_v50 = vor.u32 1.1754944e-38, %v1229_v39  ;;  %vm1238_vm0 = vweird.f32 %v1156_v54  ;;  %v1245_v13 = vor.u32 1.1754944e-38, %v1244_v6 }
 0x230   : > { %vm1253_vm2 = vweird.f32 %v1157_v53  ;;  %vm1243_vm4 = vcmp.eq.f32.partialorder %v1242_v49, 8.507059e+37  ;;  %v1260_v16 = vor.u32 1.1754944e-38, %v1259_v15  ;;  %vm1258_vm5 = vcmp.eq.f32.partialorder %v1257_v9, 8.507059e+37 }
 0x232   : > { %v1680_v40 = vpop.eup %1679 }
 0x233   : > { %v1682_v46 = vpop.eup %1681  ;;  %v1219_v61 = vmul.f32 %v1680_v40, %v1155_v52  ;;  %vm1224_vm11 = vweird.f32 %v1680_v40 }
 0x234   : > { %v1684_v41 = vpop.eup %1683  ;;  %v1234_v62 = vmul.f32 %v1682_v46, %v1156_v54  ;;  %vm1239_vm12 = vweird.f32 %v1682_v46  ;;  %vm1225_vm14 = vmor %vm1223_vm10, %vm1224_vm11 }
 0x235   : > { %v1220_v0 = vsub.f32 1.0, %v1219_v61  ;;  %v1249_v57 = vmul.f32 %v1684_v41, %v1157_v53  ;;  %vm1254_vm13 = vweird.f32 %v1684_v41  ;;  %vm1240_vm1 = vmor %vm1238_vm0, %vm1239_vm12 }
 0x236   : > { %v1235_v4 = vsub.f32 1.0, %v1234_v62  ;;  %vm1255_vm3 = vmor %vm1253_vm2, %vm1254_vm13 }
 0x237   : > { %v1221_v5 = vmul.f32 %v1680_v40, %v1220_v0  ;;  %v1250_v58 = vsub.f32 1.0, %v1249_v57 }
 0x238   : > { %v1236_v35 = vmul.f32 %v1682_v46, %v1235_v4 }
 0x239   : > { %v1222_v59 = vadd.f32 %v1680_v40, %v1221_v5  ;;  %v1251_v7 = vmul.f32 %v1684_v41, %v1250_v58 }
 0x23a   : > { %v1237_v10 = vadd.f32 %v1682_v46, %v1236_v35 }
 0x23b   : > { %v1226_v12 = vsel %vm1225_vm14, %v1680_v40, %v1222_v59  ;;  %v1252_v37 = vadd.f32 %v1684_v41, %v1251_v7 }
 0x23c   : > { %v1231_v38 = vsel %vm1228_vm15, %v1230_v50, %v1226_v12  ;;  %v1241_v14 = vsel %vm1240_vm1, %v1682_v46, %v1237_v10 }
 0x23d   : > { %v1267_v17 = vmul.f32 %v1231_v38, %v2361_v36  ;;  %v1246_v42 = vsel %vm1243_vm4, %v1245_v13, %v1241_v14  ;;  %v1256_v18 = vsel %vm1255_vm3, %v1684_v41, %v1252_v37  ;;  %1284 = sbr.rel (!%p1890_p3) target bundleno = 609 (0x261), region = 48 }
 0x23e   : > { %v1268_v19 = vmul.f32 %v1246_v42, %v2363_v44  ;;  %v1261_v8 = vsel %vm1258_vm5, %v1260_v16, %v1256_v18 }
 0x23f   : > { %1274 = vst [vmem:[%s2348_s9 + $0x20] sm:$0xff] %v1267_v17  ;;  %v1269_v60 = vmul.f32 %v1261_v8, %v2365_v29 }
 0x240   : > { %1275 = vst [vmem:[%s2348_s9 + $0x28] sm:$0xff] %v1268_v19 }
 0x241   : > { %1276 = vst [vmem:[%s2348_s9 + $0x30] sm:$0xff] %v1269_v60 }
 0x242   : > { %s2502_s16 = smov (!%p1287_p1, %s1286_s16), 7 }
 0x243   : > { %s1419_s17 = sshll.u32 %s2502_s16, 3 }
 0x244   : > { %s1290_s18 = ssub.s32 56, %s1419_s17 }
 0x245   : > { %s1291_s19 = sshll.u32 %s1290_s18, 4 }
 0x246   : > { %1292 = vsyncadd %s2385_s13, %s1291_s19  ;;  %p2394_p2 = scmp.ne.s32.totalorder %s1419_s17, 0  ;;  %s1421_s10 = sshll.u32 %s1778_s25, 3 }
 0x247   : > { %s1295_s30 = sadd.s32 %s1421_s10, %s1917_s20  ;;  %s1424_s12 = sshll.u32 %s2502_s16, 7 }
 0x248   : > { %s1422_s14 = sshll.u32 %s1295_s30, 3  ;;  %s1300_s0 = sshll.u32 %s2348_s9, 4  ;;  %s2405_s0 = int_to_ptr.vmem [resolvable:$true] %s1300_s0 }
 0x249   : > { %s1297_s18 = scalar_lea.hbm %s2460_s6, %s1422_s14  ;;  %s1685_s2 = sshra.s32 %s2405_s0, 4  ;;  %s1686_s2 = int_to_ptr.vmem [resolvable:$true] %s1685_s2 }
 0x24a   : > { %s1302_s19 = sshll.u32 %s1297_s18, 4  ;;  %s1687_s17 = sshrl.u32 %s1424_s12, 4  ;;  %s1303_s19 = int_to_ptr.hbm [resolvable:$true] %s1302_s19 }
 0x24b   : > { %s1692_s3 = scalar_lea.vmem %s1686_s2, %s1687_s17  ;;  %s1803_s25 = smov [#allocation2]  }
 0x24c   : > { %p1693_p3 = scmp.ne.s32.totalorder %s1686_s2, %s1692_s3  ;;  %s1696_s20 = scalar_lea.vmem %s1803_s25, 112 }
 0x24d   : > { %p1698_p6 = scmp.lt.s32.totalorder %s1696_s20, %s1692_s3 }
 0x24e   : > { %p1694_p4 = pnand %p1693_p3, %p2394_p2 }
 0x250   : > { %p1695_p5 = pneg %p1694_p4 }
 0x252   : > { %p1700_p7 = pnand %p1698_p6, %p1695_p5 }
 0x254   : > { %1703 = shalt.err (!%p1700_p7)
}
 0x255   : > { %s1704_s1 = sshra.s32 %s1303_s19, 4  ;;  %s1715_s2 = scalar_lea.hbm %s2460_s6, 128  ;;  %s1705_s1 = int_to_ptr.hbm [resolvable:$true] %s1704_s1 }
 0x256   : > { %s1711_s9 = scalar_lea.hbm %s1705_s1, %s1687_s17  ;;  %p1716_p12 = scmp.lt.s32.totalorder %s1705_s1, %s2460_s6 }
 0x257   : > { %p1712_p9 = scmp.ne.s32.totalorder %s1705_s1, %s1711_s9  ;;  %p1717_p13 = scmp.lt.s32.totalorder %s1715_s2, %s1711_s9 }
 0x259   : > { %p1713_p10 = pnand %p1712_p9, %p2394_p2  ;;  %p1718_p0 = por %p1717_p13, %p1716_p12 }
 0x25b   : > { %p1714_p11 = pneg %p1713_p10 }
 0x25d   : > { %p1719_p1 = pnand %p1718_p0, %p1714_p11 }
 0x25f   : > { %1722 = shalt.err (!%p1719_p1)
}
 0x260   : > { %1305 = dma.vmem_to_hbm [thread:$0]  (%p2394_p2), %s2405_s0, %s1424_s12, %s1303_s19, %s2385_s13  }
 0x261 PF: > { %p1433_p3 = scmp.ge.s32.totalorder %s1790_s28, 2  ;;  %s1314_s3 = sand.u32 1, %s1762_s21  }
 0x262   : > { %s1315_s18 = scalar_lea.sflag [#allocation3], %s1314_s3 }
 0x263   : > { %p1430_p4 = pnand %p1433_p3, %p1899_p8 }
 0x265   : > { %p1431_p5 = pneg %p1430_p4 }
 0x267   : > { %1757 = dma.done.wait (%p1431_p5), %s1315_s18, 896  }
 0x268   : > { %1759 = vsyncadd (%p1431_p5), %s1315_s18, 4294966400  ;;  %s19_s28 = sadd.s32 1, %s1790_s28   ;;  %s2484_s21 = smov %s1766_s22 }
 0x269   : > { %p16_p6 = scmp.ge.s32.totalorder %s19_s28, 6   ;;  %s2485_s22 = smov %s1770_s23 }
 0x26a   : > { %s2486_s23 = smov %s1908_s15  ;;  %s2487_s24 = smov %s1782_s26 }
 0x26b   : > { %s2488_s25 = smov %s1786_s27  ;;  %s2489_s26 = smov %s2492_s7 }
 0x26c   : > { %s2490_s27 = smov %s2496_s8  ;;  %18 = sbr.rel (!%p16_p6) target bundleno = 10 (0xa), region = 85 }
 0x271   :  { %1321 = vsyncpa [#allocation3], 1 }
 0x272   :  { %1323 = vsyncpa [#allocation3 + $0x1], 1 }

</bundles_post_ra>
